<compile_context>
chip_gen: v5e
topology: v5e:2x2
jax: 0.10.0
libtpu: 0.0.40
codegen_flags: <defaults>
</compile_context>

<pallas_src>
import functools

import jax
import jax.numpy as jnp
from jax.experimental import pallas as pl
from jax.experimental.pallas import tpu as pltpu

EPS = 1e-5   # torch.nn.InstanceNorm2d default eps
ONES = 8     # sublane rows of the all-ones bias block in the im2col scratch


def _rnd8(c):
    return ((c + 7) // 8) * 8


def _rnd128(c):
    return ((c + 127) // 128) * 128


# ----------------------------- in-kernel helpers -----------------------------

def _inorm_relu(x):
    """InstanceNorm2d (affine=False, biased var) + ReLU on (C, HW), one pass."""
    n = x.shape[1]
    s1 = jnp.sum(x, axis=1, keepdims=True)
    s2 = jnp.sum(x * x, axis=1, keepdims=True)
    mean = s1 * (1.0 / n)
    var = jnp.maximum(s2 * (1.0 / n) - mean * mean, 0.0)
    y = (x - mean) * jax.lax.rsqrt(var + EPS)
    return jnp.maximum(y, 0.0)


def _fill_im2col(col_ref, pad_ref, c_in, W, P, HW, mask_l, mask_r):
    """Write the 9 shifted windows of pad_ref into the im2col scratch.

    pad_ref : (C_pad, P + HW + P) zero-haloed flattened image (rows [0,c_in)).
    col_ref : (ONES + 9*C_in_max, HW); rows [ONES + t*c_in, ONES + (t+1)*c_in)
              receive tap t = 3*(dy+1) + (dx+1).  Column-edge masks are fused
              into the store (the windows are materialized here anyway, so the
              select adds no extra store traffic); row edges come from the
              zero halo.
    """
    t = 0
    for dy in (-1, 0, 1):
        for dx in (-1, 0, 1):
            off = dy * W + dx
            win = pad_ref[0:c_in, P + off:P + off + HW]       # (c_in, HW)
            if dx == -1:
                win = jnp.where(mask_l, win, 0.0)
            elif dx == 1:
                win = jnp.where(mask_r, win, 0.0)
            col_ref[ONES + t * c_in:ONES + (t + 1) * c_in, :] = win
            t += 1


# --------------------------------- kernel ------------------------------------

def decoder_kernel(up_ref, w1_ref, w2_ref, x_ref, skip_ref, out_ref,
                   pad_ref, col_ref, *, W, P, cxp, c1p):
    HW = out_ref.shape[2]           # H2 * W2 (lane-dense)
    B = out_ref.shape[0]            # images folded into this grid step
    cin1 = pad_ref.shape[0]         # padded conv1 input channels
    csp = skip_ref.shape[1]         # padded skip channels
    f32 = jnp.float32

    # Column-validity masks for the +/-1 x-shifts (row wrap is handled by the
    # zero halo at both ends of the flattened scratch).
    col_idx = jax.lax.broadcasted_iota(jnp.int32, (1, HW), 1) % W
    mask_l = col_idx > 0            # reading column x-1 is valid
    mask_r = col_idx < (W - 1)      # reading column x+1 is valid

    # Zero only the halo strips; interior rows are fully overwritten below.
    # Done unconditionally every step: scratch is not zero-initialized, and
    # under "parallel" semantics each core only sees a subset of grid indices.
    pad_ref[:, 0:P] = jnp.zeros((cin1, P), f32)
    pad_ref[:, P + HW:] = jnp.zeros((cin1, P), f32)
    # Bias block: ONES rows of ones; packed-weight column 0 carries the bias,
    # columns 1..ONES-1 are zero, so its contribution is exactly +bias.
    col_ref[0:ONES, :] = jnp.ones((ONES, HW), f32)

    for b in range(B):   # static per-step batch block (batch folding)
        # Bilinear upsample (align_corners=True) as one matmul, K = 128-padded.
        xu = jnp.dot(x_ref[b].astype(f32), up_ref[...],
                     preferred_element_type=f32)               # (cxp, HW)

        # torch.cat([up(x), skip], dim=1) straight into the haloed scratch.
        pad_ref[0:cxp, P:P + HW] = xu
        pad_ref[cxp:cxp + csp, P:P + HW] = skip_ref[b].astype(f32)

        # Conv2d(3x3, pad=1) + bias as ONE matmul, then InstanceNorm + ReLU.
        _fill_im2col(col_ref, pad_ref, cin1, W, P, HW, mask_l, mask_r)
        h = jnp.dot(w1_ref[...], col_ref[0:ONES + 9 * cin1, :],
                    preferred_element_type=f32)                # (c1p, HW)
        h = _inorm_relu(h)

        # Second conv block: reuse pad rows [0, c1p) and the im2col scratch.
        pad_ref[0:c1p, P:P + HW] = h
        _fill_im2col(col_ref, pad_ref, c1p, W, P, HW, mask_l, mask_r)
        h = jnp.dot(w2_ref[...], col_ref[0:ONES + 9 * c1p, :],
                    preferred_element_type=f32)                # (c2p, HW)
        h = _inorm_relu(h)

        out_ref[b] = h.astype(out_ref.dtype)


# --------------------------------- wrapper -----------------------------------

def _interp_matrix(n_in, n_out):
    """Row-stochastic bilinear interpolation matrix, align_corners=True."""
    if n_in == 1:
        return jnp.ones((n_out, n_in), jnp.float32)
    src = jnp.arange(n_out, dtype=jnp.float32) * (n_in - 1) / (n_out - 1)
    i0 = jnp.clip(jnp.floor(src).astype(jnp.int32), 0, n_in - 2)
    frac = src - i0.astype(jnp.float32)
    rows = jnp.arange(n_out)
    m = jnp.zeros((n_out, n_in), jnp.float32)
    m = m.at[rows, i0].add(1.0 - frac)
    m = m.at[rows, i0 + 1].add(frac)
    return m


def _tensorcores_per_chip():
    """Best-effort TC-per-device count (perf-only: both paths are correct)."""
    try:
        kind = jax.devices()[0].device_kind.lower()
    except Exception:
        return 1
    return 2 if any(v in kind for v in ("v7", "v4", "v3", "v5p")) else 1


def unet_decoder_forward(x, skip, params, *, images_per_step=None):
    N, Cx, H, W = x.shape
    Ns, Cs, H2, W2 = skip.shape
    assert Ns == N and H2 == 2 * H and W2 == 2 * W
    w1, b1, w2, b2 = params["w1"], params["b1"], params["w2"], params["b2"]
    C1, Cin1 = w1.shape[0], w1.shape[1]
    C2 = w2.shape[0]
    assert Cin1 == Cx + Cs and w2.shape[1] == C1

    HWin, HW = H * W, H2 * W2
    HWinp = _rnd128(HWin)                       # 128-lane-padded upsample K
    Cxp, Csp, C1p, C2p = _rnd8(Cx), _rnd8(Cs), _rnd8(C1), _rnd8(C2)
    CIN1p = Cxp + Csp
    K1 = ONES + 9 * CIN1p                        # packed conv1 contraction dim
    K2 = ONES + 9 * C1p                          # packed conv2 contraction dim
    # Flat halo width: must cover +/-(W2+1); a 128-multiple keeps the interior
    # of the pad scratch lane-aligned.
    P = ((W2 + 128) // 128) * 128
    f32 = jnp.float32

    # Bilinear (align_corners=True) upsample operator as a single matrix,
    # zero-row-padded so the matmul K is a full 128 multiple.
    # TODO(synk): for large feature maps switch to the separable (UH, UW)
    # two-matmul form; the kron matrix is (H*W, H2*W2) and only sensible for
    # small tiles (it would overflow v7x's 64 MiB VMEM first).
    uh = _interp_matrix(H, H2)
    uw = _interp_matrix(W, W2)
    up_mat = jnp.zeros((HWinp, HW), f32).at[:HWin, :].set(
        jnp.kron(uh, uw).T.astype(f32))                       # (HWinp, HW)

    # Packed conv weights (C_out_pad, ONES + 9*C_in_pad); column 0 = bias so
    # the bias add is fused into the matmul via the ones block.  Zero-padded
    # output-channel rows stay exactly zero (InstanceNorm invariant).
    # TODO(synk): cast MXU operands (up_mat, packed weights, im2col) to bf16
    # on v6e/v7x at production sizes; kept f32 here to hold the 1e-3 f32 check.
    w1f, w2f = w1.astype(f32), w2.astype(f32)
    w1p = jnp.zeros((C1p, K1), f32).at[:C1, 0].set(b1.astype(f32))
    w2p = jnp.zeros((C2p, K2), f32).at[:C2, 0].set(b2.astype(f32))
    for ky in range(3):
        for kx in range(3):
            t = 3 * ky + kx                      # matches kernel tap order
            b1c = ONES + t * CIN1p
            w1p = w1p.at[:C1, b1c:b1c + Cx].set(w1f[:, :Cx, ky, kx])
            w1p = w1p.at[:C1, b1c + Cxp:b1c + Cxp + Cs].set(w1f[:, Cx:, ky, kx])
            b2c = ONES + t * C1p
            w2p = w2p.at[:C2, b2c:b2c + C1].set(w2f[:, :, ky, kx])

    # Lane-dense activations, channel- and lane-padded with zeros.
    x_flat = jnp.zeros((N, Cxp, HWinp), f32).at[:, :Cx, :HWin].set(
        x.reshape(N, Cx, HWin).astype(f32))
    skip_flat = jnp.zeros((N, Csp, HW), f32).at[:, :Cs, :].set(
        skip.reshape(N, Cs, HW).astype(f32))

    # Batch folding: single-TC chips run the whole batch in one grid step;
    # multi-TC chips keep grid=(N,) "parallel" for megacore.
    if images_per_step is None:
        images_per_step = 1 if _tensorcores_per_chip() > 1 else N
    images_per_step = max(1, min(int(images_per_step), N))
    while N % images_per_step:
        images_per_step -= 1
    num_steps = N // images_per_step

    # VMEM budget from the actual buffers (double-buffered blocks + scratch).
    block_bytes = 4 * (HWinp * HW + C1p * K1 + C2p * K2 +
                       images_per_step * (Cxp * HWinp + Csp * HW + C2p * HW))
    scratch_bytes = 4 * (CIN1p * (2 * P + HW) + K1 * HW)
    vmem_limit = int(2 * block_bytes + scratch_bytes + (4 << 20))

    kernel = functools.partial(decoder_kernel, W=W2, P=P, cxp=Cxp, c1p=C1p)
    out = pl.pallas_call(
        kernel,
        out_shape=jax.ShapeDtypeStruct((N, C2p, HW), f32),
        grid_spec=pltpu.PrefetchScalarGridSpec(
            num_scalar_prefetch=0,
            grid=(num_steps,),
            in_specs=[
                # Constant-index weight blocks: fetched once, not per step.
                pl.BlockSpec((HWinp, HW), lambda n: (0, 0)),          # up_mat
                pl.BlockSpec((C1p, K1), lambda n: (0, 0)),            # conv1 W|b
                pl.BlockSpec((C2p, K2), lambda n: (0, 0)),            # conv2 W|b
                pl.BlockSpec((images_per_step, Cxp, HWinp),
                             lambda n: (n, 0, 0)),                    # x
                pl.BlockSpec((images_per_step, Csp, HW),
                             lambda n: (n, 0, 0)),                    # skip
            ],
            out_specs=pl.BlockSpec((images_per_step, C2p, HW),
                                   lambda n: (n, 0, 0)),
            scratch_shapes=[
                pltpu.VMEM((CIN1p, 2 * P + HW), f32),   # zero-haloed image
                pltpu.VMEM((K1, HW), f32),              # im2col + ones block
            ],
        ),
        compiler_params=pltpu.CompilerParams(
            dimension_semantics=("parallel",),
            vmem_limit_bytes=vmem_limit),
    )(up_mat, w1p, w2p, x_flat, skip_flat)

    # Strip channel padding, back to NCHW.
    return out[:, :C2, :].reshape(N, C2, H2, W2)


# ------------------------------ pure-JAX reference ----------------------------

def reference_forward(x, skip, params):
    N, Cx, H, W = x.shape
    H2, W2 = 2 * H, 2 * W
    uh = _interp_matrix(H, H2)
    uw = _interp_matrix(W, W2)
    xu = jnp.einsum('oh,nchw->ncow', uh, x)
    xu = jnp.einsum('ncow,pw->ncop', xu, uw)
    cat = jnp.concatenate([xu, skip], axis=1)

    def conv(z, w, b):
        y = jax.lax.conv_general_dilated(
            z, w, window_strides=(1, 1), padding=((1, 1), (1, 1)),
            dimension_numbers=('NCHW', 'OIHW', 'NCHW'))
        return y + b[None, :, None, None]

    def inorm_relu(z):
        mean = jnp.mean(z, axis=(2, 3), keepdims=True)
        var = jnp.mean((z - mean) ** 2, axis=(2, 3), keepdims=True)
        return jnp.maximum((z - mean) * jax.lax.rsqrt(var + EPS), 0.0)

    h = inorm_relu(conv(cat, params["w1"], params["b1"]))
    h = inorm_relu(conv(h, params["w2"], params["b2"]))
    return h


# ----------------------------------- main -------------------------------------

if __name__ == "__main__":
    # Module config: UNetDecoder(in_channels=8, out_channels=8)
    in_channels, out_channels = 8, 8
    N, H, W = 2, 8, 8
    Cx = out_channels           # x (previous decoder stage) channels
    Cs = in_channels // 2       # skip-connection channels
    C1 = out_channels           # first conv out channels
    C2 = out_channels // 2      # second conv out channels

    key = jax.random.PRNGKey(0)
    kx, ks, k1, k2, k3, k4 = jax.random.split(key, 6)
    x = jax.random.normal(kx, (N, Cx, H, W), jnp.float32)
    skip = jax.random.normal(ks, (N, Cs, 2 * H, 2 * W), jnp.float32)
    params = {
        "w1": 0.1 * jax.random.normal(k1, (C1, Cx + Cs, 3, 3), jnp.float32),
        "b1": 0.1 * jax.random.normal(k2, (C1,), jnp.float32),
        "w2": 0.1 * jax.random.normal(k3, (C2, C1, 3, 3), jnp.float32),
        "b2": 0.1 * jax.random.normal(k4, (C2,), jnp.float32),
    }

    out = jax.block_until_ready(unet_decoder_forward(x, skip, params))
    ref = jax.block_until_ready(reference_forward(x, skip, params))

    assert out.shape == (N, C2, 2 * H, 2 * W), out.shape
    assert jnp.allclose(out, ref, rtol=1e-3, atol=1e-3), \
        float(jnp.max(jnp.abs(out - ref)))
    print("KERNEL_OK")
</pallas_src>

<mosaic_0001>
module attributes {stable_mosaic.version = 11 : i64} {
  func.func @decoder_kernel(%arg0: i32, %arg1: memref<128x256xf32, #tpu.memory_space<vmem>>, %arg2: memref<8x152xf32, #tpu.memory_space<vmem>>, %arg3: memref<8x80xf32, #tpu.memory_space<vmem>>, %arg4: memref<2x8x128xf32, #tpu.memory_space<vmem>>, %arg5: memref<2x8x256xf32, #tpu.memory_space<vmem>>, %arg6: memref<2x8x256xf32, #tpu.memory_space<vmem>>, %arg7: memref<16x512xf32, #tpu.memory_space<vmem>>, %arg8: memref<152x256xf32, #tpu.memory_space<vmem>>) attributes {dimension_semantics = [#tpu.dimension_semantics<parallel>], iteration_bounds = array<i64: 1>, scalar_prefetch = 0 : i64, scratch_operands = 2 : i64, tpu.core_type = #tpu.core_type<tc>, window_params = [{pipeline_mode = #tpu.pipeline_mode<synchronous>, transform_indices = @transform_0, window_bounds = array<i64: 128, 256>}, {pipeline_mode = #tpu.pipeline_mode<synchronous>, transform_indices = @transform_1, window_bounds = array<i64: 8, 152>}, {pipeline_mode = #tpu.pipeline_mode<synchronous>, transform_indices = @transform_2, window_bounds = array<i64: 8, 80>}, {transform_indices = @transform_3, window_bounds = array<i64: 2, 8, 128>}, {transform_indices = @transform_4, window_bounds = array<i64: 2, 8, 256>}, {transform_indices = @transform_5, window_bounds = array<i64: 2, 8, 256>}]} {
    %0 = tpu.iota {dimensions = array<i32: 1>} : vector<1x256xi32>
    %c16_i32 = arith.constant 16 : i32
    %c0_i32 = arith.constant 0 : i32
    %1 = arith.cmpi eq, %c16_i32, %c0_i32 : i32
    %c1_i32 = arith.constant 1 : i32
    %2 = arith.select %1, %c1_i32, %c16_i32 : i32
    %3 = vector.broadcast %2 : i32 to vector<1x256xi32>
    %4 = arith.remsi %0, %3 : vector<1x256xi32>
    %c0_i32_0 = arith.constant 0 : i32
    %5 = vector.broadcast %c0_i32_0 : i32 to vector<1x256xi32>
    %6 = arith.cmpi ne, %4, %5 : vector<1x256xi32>
    %c0_i32_1 = arith.constant 0 : i32
    %7 = vector.broadcast %c0_i32_1 : i32 to vector<1x256xi32>
    %8 = arith.cmpi slt, %4, %7 : vector<1x256xi32>
    %c0_i32_2 = arith.constant 0 : i32
    %9 = arith.cmpi slt, %2, %c0_i32_2 : i32
    %10 = vector.broadcast %9 : i1 to vector<1x256xi1>
    %11 = vector.broadcast %10 : vector<1x256xi1> to vector<1x256xi1>
    %12 = arith.xori %8, %11 : vector<1x256xi1>
    %13 = arith.andi %12, %6 : vector<1x256xi1>
    %14 = vector.broadcast %2 : i32 to vector<1x256xi32>
    %15 = arith.addi %4, %14 : vector<1x256xi32>
    %16 = arith.select %13, %15, %4 : vector<1x256xi1>, vector<1x256xi32>
    %c0_i32_3 = arith.constant 0 : i32
    %17 = vector.broadcast %c0_i32_3 : i32 to vector<1x256xi32>
    %18 = arith.cmpi sgt, %16, %17 : vector<1x256xi32>
    %c15_i32 = arith.constant 15 : i32
    %19 = vector.broadcast %c15_i32 : i32 to vector<1x256xi32>
    %20 = arith.cmpi slt, %16, %19 : vector<1x256xi32>
    %cst = arith.constant 0.000000e+00 : f32
    %21 = vector.broadcast %cst : f32 to vector<16x128xf32>
    %c0 = arith.constant 0 : index
    %c0_4 = arith.constant 0 : index
    %22 = vector.load %arg7[%c0, %c0_4] : memref<16x512xf32, #tpu.memory_space<vmem>>, vector<16x128xf32>
    tpu.vector_store %arg7[%c0, %c0_4], %21 {strides = array<i32>} : memref<16x512xf32, #tpu.memory_space<vmem>>, vector<16x128xf32>,
    %cst_5 = arith.constant 0.000000e+00 : f32
    %23 = vector.broadcast %cst_5 : f32 to vector<16x128xf32>
    %c0_6 = arith.constant 0 : index
    %c384 = arith.constant 384 : index
    %24 = vector.load %arg7[%c0_6, %c384] : memref<16x512xf32, #tpu.memory_space<vmem>>, vector<16x128xf32>
    tpu.vector_store %arg7[%c0_6, %c384], %23 {strides = array<i32>} : memref<16x512xf32, #tpu.memory_space<vmem>>, vector<16x128xf32>,
    %cst_7 = arith.constant 1.000000e+00 : f32
    %25 = vector.broadcast %cst_7 : f32 to vector<8x256xf32>
    %c0_8 = arith.constant 0 : index
    %c0_9 = arith.constant 0 : index
    %26 = vector.load %arg8[%c0_8, %c0_9] : memref<152x256xf32, #tpu.memory_space<vmem>>, vector<8x256xf32>
    tpu.vector_store %arg8[%c0_8, %c0_9], %25 {strides = array<i32>} : memref<152x256xf32, #tpu.memory_space<vmem>>, vector<8x256xf32>,
    %c0_10 = arith.constant 0 : index
    %c0_11 = arith.constant 0 : index
    %c0_12 = arith.constant 0 : index
    %27 = vector.load %arg4[%c0_10, %c0_11, %c0_12] : memref<2x8x128xf32, #tpu.memory_space<vmem>>, vector<1x8x128xf32>
    %28 = vector.shape_cast %27 : vector<1x8x128xf32> to vector<8x128xf32>
    %c0_13 = arith.constant 0 : index
    %c0_14 = arith.constant 0 : index
    %29 = vector.load %arg1[%c0_13, %c0_14] : memref<128x256xf32, #tpu.memory_space<vmem>>, vector<128x256xf32>
    %cst_15 = arith.constant dense<0.000000e+00> : vector<8x256xf32>
    %30 = tpu.matmul %28, %29, %cst_15 {dimension_numbers = #tpu.dot_dimension_numbers<[1], [0], [0], [1], [0, 0, 1, 1], [], []>} : vector<8x128xf32>, vector<128x256xf32>, vector<8x256xf32> -> vector<8x256xf32>
    %c0_16 = arith.constant 0 : index
    %c128 = arith.constant 128 : index
    %31 = vector.load %arg7[%c0_16, %c128] : memref<16x512xf32, #tpu.memory_space<vmem>>, vector<8x256xf32>
    tpu.vector_store %arg7[%c0_16, %c128], %30 {strides = array<i32>} : memref<16x512xf32, #tpu.memory_space<vmem>>, vector<8x256xf32>,
    %c0_17 = arith.constant 0 : index
    %c0_18 = arith.constant 0 : index
    %c0_19 = arith.constant 0 : index
    %32 = vector.load %arg5[%c0_17, %c0_18, %c0_19] : memref<2x8x256xf32, #tpu.memory_space<vmem>>, vector<1x8x256xf32>
    %33 = vector.shape_cast %32 : vector<1x8x256xf32> to vector<8x256xf32>
    %c8 = arith.constant 8 : index
    %c128_20 = arith.constant 128 : index
    %34 = vector.load %arg7[%c8, %c128_20] : memref<16x512xf32, #tpu.memory_space<vmem>>, vector<8x256xf32>
    tpu.vector_store %arg7[%c8, %c128_20], %33 {strides = array<i32>} : memref<16x512xf32, #tpu.memory_space<vmem>>, vector<8x256xf32>,
    %c0_21 = arith.constant 0 : index
    %c111 = arith.constant 111 : index
    %35 = vector.load %arg7[%c0_21, %c111] : memref<16x512xf32, #tpu.memory_space<vmem>>, vector<16x256xf32>
    %cst_22 = arith.constant 0.000000e+00 : f32
    %36 = vector.shape_cast %18 : vector<1x256xi1> to vector<1x256xi1>
    %37 = vector.broadcast %36 : vector<1x256xi1> to vector<16x256xi1>
    %38 = vector.broadcast %cst_22 : f32 to vector<16x256xf32>
    %39 = arith.select %37, %35, %38 : vector<16x256xi1>, vector<16x256xf32>
    %c8_23 = arith.constant 8 : index
    %c0_24 = arith.constant 0 : index
    %40 = vector.load %arg8[%c8_23, %c0_24] : memref<152x256xf32, #tpu.memory_space<vmem>>, vector<16x256xf32>
    tpu.vector_store %arg8[%c8_23, %c0_24], %39 {strides = array<i32>} : memref<152x256xf32, #tpu.memory_space<vmem>>, vector<16x256xf32>,
    %c0_25 = arith.constant 0 : index
    %c112 = arith.constant 112 : index
    %41 = vector.load %arg7[%c0_25, %c112] : memref<16x512xf32, #tpu.memory_space<vmem>>, vector<16x256xf32>
    %c24 = arith.constant 24 : index
    %c0_26 = arith.constant 0 : index
    %42 = vector.load %arg8[%c24, %c0_26] : memref<152x256xf32, #tpu.memory_space<vmem>>, vector<16x256xf32>
    tpu.vector_store %arg8[%c24, %c0_26], %41 {strides = array<i32>} : memref<152x256xf32, #tpu.memory_space<vmem>>, vector<16x256xf32>,
    %c0_27 = arith.constant 0 : index
    %c113 = arith.constant 113 : index
    %43 = vector.load %arg7[%c0_27, %c113] : memref<16x512xf32, #tpu.memory_space<vmem>>, vector<16x256xf32>
    %cst_28 = arith.constant 0.000000e+00 : f32
    %44 = vector.shape_cast %20 : vector<1x256xi1> to vector<1x256xi1>
    %45 = vector.broadcast %44 : vector<1x256xi1> to vector<16x256xi1>
    %46 = vector.broadcast %cst_28 : f32 to vector<16x256xf32>
    %47 = arith.select %45, %43, %46 : vector<16x256xi1>, vector<16x256xf32>
    %c40 = arith.constant 40 : index
    %c0_29 = arith.constant 0 : index
    %48 = vector.load %arg8[%c40, %c0_29] : memref<152x256xf32, #tpu.memory_space<vmem>>, vector<16x256xf32>
    tpu.vector_store %arg8[%c40, %c0_29], %47 {strides = array<i32>} : memref<152x256xf32, #tpu.memory_space<vmem>>, vector<16x256xf32>,
    %c0_30 = arith.constant 0 : index
    %c127 = arith.constant 127 : index
    %49 = vector.load %arg7[%c0_30, %c127] : memref<16x512xf32, #tpu.memory_space<vmem>>, vector<16x256xf32>
    %cst_31 = arith.constant 0.000000e+00 : f32
    %50 = vector.shape_cast %18 : vector<1x256xi1> to vector<1x256xi1>
    %51 = vector.broadcast %50 : vector<1x256xi1> to vector<16x256xi1>
    %52 = vector.broadcast %cst_31 : f32 to vector<16x256xf32>
    %53 = arith.select %51, %49, %52 : vector<16x256xi1>, vector<16x256xf32>
    %c56 = arith.constant 56 : index
    %c0_32 = arith.constant 0 : index
    %54 = vector.load %arg8[%c56, %c0_32] : memref<152x256xf32, #tpu.memory_space<vmem>>, vector<16x256xf32>
    tpu.vector_store %arg8[%c56, %c0_32], %53 {strides = array<i32>} : memref<152x256xf32, #tpu.memory_space<vmem>>, vector<16x256xf32>,
    %c0_33 = arith.constant 0 : index
    %c128_34 = arith.constant 128 : index
    %55 = vector.load %arg7[%c0_33, %c128_34] : memref<16x512xf32, #tpu.memory_space<vmem>>, vector<16x256xf32>
    %c72 = arith.constant 72 : index
    %c0_35 = arith.constant 0 : index
    %56 = vector.load %arg8[%c72, %c0_35] : memref<152x256xf32, #tpu.memory_space<vmem>>, vector<16x256xf32>
    tpu.vector_store %arg8[%c72, %c0_35], %55 {strides = array<i32>} : memref<152x256xf32, #tpu.memory_space<vmem>>, vector<16x256xf32>,
    %c0_36 = arith.constant 0 : index
    %c129 = arith.constant 129 : index
    %57 = vector.load %arg7[%c0_36, %c129] : memref<16x512xf32, #tpu.memory_space<vmem>>, vector<16x256xf32>
    %cst_37 = arith.constant 0.000000e+00 : f32
    %58 = vector.shape_cast %20 : vector<1x256xi1> to vector<1x256xi1>
    %59 = vector.broadcast %58 : vector<1x256xi1> to vector<16x256xi1>
    %60 = vector.broadcast %cst_37 : f32 to vector<16x256xf32>
    %61 = arith.select %59, %57, %60 : vector<16x256xi1>, vector<16x256xf32>
    %c88 = arith.constant 88 : index
    %c0_38 = arith.constant 0 : index
    %62 = vector.load %arg8[%c88, %c0_38] : memref<152x256xf32, #tpu.memory_space<vmem>>, vector<16x256xf32>
    tpu.vector_store %arg8[%c88, %c0_38], %61 {strides = array<i32>} : memref<152x256xf32, #tpu.memory_space<vmem>>, vector<16x256xf32>,
    %c0_39 = arith.constant 0 : index
    %c143 = arith.constant 143 : index
    %63 = vector.load %arg7[%c0_39, %c143] : memref<16x512xf32, #tpu.memory_space<vmem>>, vector<16x256xf32>
    %cst_40 = arith.constant 0.000000e+00 : f32
    %64 = vector.shape_cast %18 : vector<1x256xi1> to vector<1x256xi1>
    %65 = vector.broadcast %64 : vector<1x256xi1> to vector<16x256xi1>
    %66 = vector.broadcast %cst_40 : f32 to vector<16x256xf32>
    %67 = arith.select %65, %63, %66 : vector<16x256xi1>, vector<16x256xf32>
    %c104 = arith.constant 104 : index
    %c0_41 = arith.constant 0 : index
    %68 = vector.load %arg8[%c104, %c0_41] : memref<152x256xf32, #tpu.memory_space<vmem>>, vector<16x256xf32>
    tpu.vector_store %arg8[%c104, %c0_41], %67 {strides = array<i32>} : memref<152x256xf32, #tpu.memory_space<vmem>>, vector<16x256xf32>,
    %c0_42 = arith.constant 0 : index
    %c144 = arith.constant 144 : index
    %69 = vector.load %arg7[%c0_42, %c144] : memref<16x512xf32, #tpu.memory_space<vmem>>, vector<16x256xf32>
    %c120 = arith.constant 120 : index
    %c0_43 = arith.constant 0 : index
    %70 = vector.load %arg8[%c120, %c0_43] : memref<152x256xf32, #tpu.memory_space<vmem>>, vector<16x256xf32>
    tpu.vector_store %arg8[%c120, %c0_43], %69 {strides = array<i32>} : memref<152x256xf32, #tpu.memory_space<vmem>>, vector<16x256xf32>,
    %c0_44 = arith.constant 0 : index
    %c145 = arith.constant 145 : index
    %71 = vector.load %arg7[%c0_44, %c145] : memref<16x512xf32, #tpu.memory_space<vmem>>, vector<16x256xf32>
    %cst_45 = arith.constant 0.000000e+00 : f32
    %72 = vector.shape_cast %20 : vector<1x256xi1> to vector<1x256xi1>
    %73 = vector.broadcast %72 : vector<1x256xi1> to vector<16x256xi1>
    %74 = vector.broadcast %cst_45 : f32 to vector<16x256xf32>
    %75 = arith.select %73, %71, %74 : vector<16x256xi1>, vector<16x256xf32>
    %c136 = arith.constant 136 : index
    %c0_46 = arith.constant 0 : index
    %76 = vector.load %arg8[%c136, %c0_46] : memref<152x256xf32, #tpu.memory_space<vmem>>, vector<16x256xf32>
    tpu.vector_store %arg8[%c136, %c0_46], %75 {strides = array<i32>} : memref<152x256xf32, #tpu.memory_space<vmem>>, vector<16x256xf32>,
    %c0_47 = arith.constant 0 : index
    %c0_48 = arith.constant 0 : index
    %77 = vector.load %arg2[%c0_47, %c0_48] : memref<8x152xf32, #tpu.memory_space<vmem>>, vector<8x152xf32>
    %c0_49 = arith.constant 0 : index
    %c0_50 = arith.constant 0 : index
    %78 = vector.load %arg8[%c0_49, %c0_50] : memref<152x256xf32, #tpu.memory_space<vmem>>, vector<152x256xf32>
    %cst_51 = arith.constant dense<0.000000e+00> : vector<8x256xf32>
    %79 = tpu.matmul %77, %78, %cst_51 {dimension_numbers = #tpu.dot_dimension_numbers<[1], [0], [0], [1], [0, 0, 1, 1], [], []>} : vector<8x152xf32>, vector<152x256xf32>, vector<8x256xf32> -> vector<8x256xf32>
    %cst_52 = arith.constant dense<0.000000e+00> : vector<8xf32>
    %80 = vector.multi_reduction <add>, %79, %cst_52 [1] : vector<8x256xf32> to vector<8xf32>
    %81 = vector.shape_cast %80 : vector<8xf32> to vector<8x1xf32>
    %82 = arith.mulf %79, %79 : vector<8x256xf32>
    %cst_53 = arith.constant dense<0.000000e+00> : vector<8xf32>
    %83 = vector.multi_reduction <add>, %82, %cst_53 [1] : vector<8x256xf32> to vector<8xf32>
    %84 = vector.shape_cast %83 : vector<8xf32> to vector<8x1xf32>
    %cst_54 = arith.constant 3.906250e-03 : f32
    %85 = vector.broadcast %cst_54 : f32 to vector<8x1xf32>
    %86 = arith.mulf %81, %85 : vector<8x1xf32>
    %cst_55 = arith.constant 3.906250e-03 : f32
    %87 = vector.broadcast %cst_55 : f32 to vector<8x1xf32>
    %88 = arith.mulf %84, %87 : vector<8x1xf32>
    %89 = arith.mulf %86, %86 : vector<8x1xf32>
    %90 = arith.subf %88, %89 : vector<8x1xf32>
    %cst_56 = arith.constant 0.000000e+00 : f32
    %91 = vector.broadcast %cst_56 : f32 to vector<8x1xf32>
    %92 = arith.maximumf %90, %91 : vector<8x1xf32>
    %93 = vector.broadcast %86 : vector<8x1xf32> to vector<8x256xf32>
    %94 = arith.subf %79, %93 : vector<8x256xf32>
    %cst_57 = arith.constant 9.99999974E-6 : f32
    %95 = vector.broadcast %cst_57 : f32 to vector<8x1xf32>
    %96 = arith.addf %92, %95 : vector<8x1xf32>
    %97 = math.rsqrt %96 : vector<8x1xf32>
    %98 = vector.broadcast %97 : vector<8x1xf32> to vector<8x256xf32>
    %99 = arith.mulf %94, %98 : vector<8x256xf32>
    %cst_58 = arith.constant 0.000000e+00 : f32
    %100 = vector.broadcast %cst_58 : f32 to vector<8x256xf32>
    %101 = arith.maximumf %99, %100 : vector<8x256xf32>
    %c0_59 = arith.constant 0 : index
    %c128_60 = arith.constant 128 : index
    %102 = vector.load %arg7[%c0_59, %c128_60] : memref<16x512xf32, #tpu.memory_space<vmem>>, vector<8x256xf32>
    tpu.vector_store %arg7[%c0_59, %c128_60], %101 {strides = array<i32>} : memref<16x512xf32, #tpu.memory_space<vmem>>, vector<8x256xf32>,
    %c0_61 = arith.constant 0 : index
    %c111_62 = arith.constant 111 : index
    %103 = vector.load %arg7[%c0_61, %c111_62] : memref<16x512xf32, #tpu.memory_space<vmem>>, vector<8x256xf32>
    %cst_63 = arith.constant 0.000000e+00 : f32
    %104 = vector.shape_cast %18 : vector<1x256xi1> to vector<1x256xi1>
    %105 = vector.broadcast %104 : vector<1x256xi1> to vector<8x256xi1>
    %106 = vector.broadcast %cst_63 : f32 to vector<8x256xf32>
    %107 = arith.select %105, %103, %106 : vector<8x256xi1>, vector<8x256xf32>
    %c8_64 = arith.constant 8 : index
    %c0_65 = arith.constant 0 : index
    %108 = vector.load %arg8[%c8_64, %c0_65] : memref<152x256xf32, #tpu.memory_space<vmem>>, vector<8x256xf32>
    tpu.vector_store %arg8[%c8_64, %c0_65], %107 {strides = array<i32>} : memref<152x256xf32, #tpu.memory_space<vmem>>, vector<8x256xf32>,
    %c0_66 = arith.constant 0 : index
    %c112_67 = arith.constant 112 : index
    %109 = vector.load %arg7[%c0_66, %c112_67] : memref<16x512xf32, #tpu.memory_space<vmem>>, vector<8x256xf32>
    %c16 = arith.constant 16 : index
    %c0_68 = arith.constant 0 : index
    %110 = vector.load %arg8[%c16, %c0_68] : memref<152x256xf32, #tpu.memory_space<vmem>>, vector<8x256xf32>
    tpu.vector_store %arg8[%c16, %c0_68], %109 {strides = array<i32>} : memref<152x256xf32, #tpu.memory_space<vmem>>, vector<8x256xf32>,
    %c0_69 = arith.constant 0 : index
    %c113_70 = arith.constant 113 : index
    %111 = vector.load %arg7[%c0_69, %c113_70] : memref<16x512xf32, #tpu.memory_space<vmem>>, vector<8x256xf32>
    %cst_71 = arith.constant 0.000000e+00 : f32
    %112 = vector.shape_cast %20 : vector<1x256xi1> to vector<1x256xi1>
    %113 = vector.broadcast %112 : vector<1x256xi1> to vector<8x256xi1>
    %114 = vector.broadcast %cst_71 : f32 to vector<8x256xf32>
    %115 = arith.select %113, %111, %114 : vector<8x256xi1>, vector<8x256xf32>
    %c24_72 = arith.constant 24 : index
    %c0_73 = arith.constant 0 : index
    %116 = vector.load %arg8[%c24_72, %c0_73] : memref<152x256xf32, #tpu.memory_space<vmem>>, vector<8x256xf32>
    tpu.vector_store %arg8[%c24_72, %c0_73], %115 {strides = array<i32>} : memref<152x256xf32, #tpu.memory_space<vmem>>, vector<8x256xf32>,
    %c0_74 = arith.constant 0 : index
    %c127_75 = arith.constant 127 : index
    %117 = vector.load %arg7[%c0_74, %c127_75] : memref<16x512xf32, #tpu.memory_space<vmem>>, vector<8x256xf32>
    %cst_76 = arith.constant 0.000000e+00 : f32
    %118 = vector.shape_cast %18 : vector<1x256xi1> to vector<1x256xi1>
    %119 = vector.broadcast %118 : vector<1x256xi1> to vector<8x256xi1>
    %120 = vector.broadcast %cst_76 : f32 to vector<8x256xf32>
    %121 = arith.select %119, %117, %120 : vector<8x256xi1>, vector<8x256xf32>
    %c32 = arith.constant 32 : index
    %c0_77 = arith.constant 0 : index
    %122 = vector.load %arg8[%c32, %c0_77] : memref<152x256xf32, #tpu.memory_space<vmem>>, vector<8x256xf32>
    tpu.vector_store %arg8[%c32, %c0_77], %121 {strides = array<i32>} : memref<152x256xf32, #tpu.memory_space<vmem>>, vector<8x256xf32>,
    %c0_78 = arith.constant 0 : index
    %c128_79 = arith.constant 128 : index
    %123 = vector.load %arg7[%c0_78, %c128_79] : memref<16x512xf32, #tpu.memory_space<vmem>>, vector<8x256xf32>
    %c40_80 = arith.constant 40 : index
    %c0_81 = arith.constant 0 : index
    %124 = vector.load %arg8[%c40_80, %c0_81] : memref<152x256xf32, #tpu.memory_space<vmem>>, vector<8x256xf32>
    tpu.vector_store %arg8[%c40_80, %c0_81], %123 {strides = array<i32>} : memref<152x256xf32, #tpu.memory_space<vmem>>, vector<8x256xf32>,
    %c0_82 = arith.constant 0 : index
    %c129_83 = arith.constant 129 : index
    %125 = vector.load %arg7[%c0_82, %c129_83] : memref<16x512xf32, #tpu.memory_space<vmem>>, vector<8x256xf32>
    %cst_84 = arith.constant 0.000000e+00 : f32
    %126 = vector.shape_cast %20 : vector<1x256xi1> to vector<1x256xi1>
    %127 = vector.broadcast %126 : vector<1x256xi1> to vector<8x256xi1>
    %128 = vector.broadcast %cst_84 : f32 to vector<8x256xf32>
    %129 = arith.select %127, %125, %128 : vector<8x256xi1>, vector<8x256xf32>
    %c48 = arith.constant 48 : index
    %c0_85 = arith.constant 0 : index
    %130 = vector.load %arg8[%c48, %c0_85] : memref<152x256xf32, #tpu.memory_space<vmem>>, vector<8x256xf32>
    tpu.vector_store %arg8[%c48, %c0_85], %129 {strides = array<i32>} : memref<152x256xf32, #tpu.memory_space<vmem>>, vector<8x256xf32>,
    %c0_86 = arith.constant 0 : index
    %c143_87 = arith.constant 143 : index
    %131 = vector.load %arg7[%c0_86, %c143_87] : memref<16x512xf32, #tpu.memory_space<vmem>>, vector<8x256xf32>
    %cst_88 = arith.constant 0.000000e+00 : f32
    %132 = vector.shape_cast %18 : vector<1x256xi1> to vector<1x256xi1>
    %133 = vector.broadcast %132 : vector<1x256xi1> to vector<8x256xi1>
    %134 = vector.broadcast %cst_88 : f32 to vector<8x256xf32>
    %135 = arith.select %133, %131, %134 : vector<8x256xi1>, vector<8x256xf32>
    %c56_89 = arith.constant 56 : index
    %c0_90 = arith.constant 0 : index
    %136 = vector.load %arg8[%c56_89, %c0_90] : memref<152x256xf32, #tpu.memory_space<vmem>>, vector<8x256xf32>
    tpu.vector_store %arg8[%c56_89, %c0_90], %135 {strides = array<i32>} : memref<152x256xf32, #tpu.memory_space<vmem>>, vector<8x256xf32>,
    %c0_91 = arith.constant 0 : index
    %c144_92 = arith.constant 144 : index
    %137 = vector.load %arg7[%c0_91, %c144_92] : memref<16x512xf32, #tpu.memory_space<vmem>>, vector<8x256xf32>
    %c64 = arith.constant 64 : index
    %c0_93 = arith.constant 0 : index
    %138 = vector.load %arg8[%c64, %c0_93] : memref<152x256xf32, #tpu.memory_space<vmem>>, vector<8x256xf32>
    tpu.vector_store %arg8[%c64, %c0_93], %137 {strides = array<i32>} : memref<152x256xf32, #tpu.memory_space<vmem>>, vector<8x256xf32>,
    %c0_94 = arith.constant 0 : index
    %c145_95 = arith.constant 145 : index
    %139 = vector.load %arg7[%c0_94, %c145_95] : memref<16x512xf32, #tpu.memory_space<vmem>>, vector<8x256xf32>
    %cst_96 = arith.constant 0.000000e+00 : f32
    %140 = vector.shape_cast %20 : vector<1x256xi1> to vector<1x256xi1>
    %141 = vector.broadcast %140 : vector<1x256xi1> to vector<8x256xi1>
    %142 = vector.broadcast %cst_96 : f32 to vector<8x256xf32>
    %143 = arith.select %141, %139, %142 : vector<8x256xi1>, vector<8x256xf32>
    %c72_97 = arith.constant 72 : index
    %c0_98 = arith.constant 0 : index
    %144 = vector.load %arg8[%c72_97, %c0_98] : memref<152x256xf32, #tpu.memory_space<vmem>>, vector<8x256xf32>
    tpu.vector_store %arg8[%c72_97, %c0_98], %143 {strides = array<i32>} : memref<152x256xf32, #tpu.memory_space<vmem>>, vector<8x256xf32>,
    %c0_99 = arith.constant 0 : index
    %c0_100 = arith.constant 0 : index
    %145 = vector.load %arg3[%c0_99, %c0_100] : memref<8x80xf32, #tpu.memory_space<vmem>>, vector<8x80xf32>
    %c0_101 = arith.constant 0 : index
    %c0_102 = arith.constant 0 : index
    %146 = vector.load %arg8[%c0_101, %c0_102] : memref<152x256xf32, #tpu.memory_space<vmem>>, vector<80x256xf32>
    %cst_103 = arith.constant dense<0.000000e+00> : vector<8x256xf32>
    %147 = tpu.matmul %145, %146, %cst_103 {dimension_numbers = #tpu.dot_dimension_numbers<[1], [0], [0], [1], [0, 0, 1, 1], [], []>} : vector<8x80xf32>, vector<80x256xf32>, vector<8x256xf32> -> vector<8x256xf32>
    %cst_104 = arith.constant dense<0.000000e+00> : vector<8xf32>
    %148 = vector.multi_reduction <add>, %147, %cst_104 [1] : vector<8x256xf32> to vector<8xf32>
    %149 = vector.shape_cast %148 : vector<8xf32> to vector<8x1xf32>
    %150 = arith.mulf %147, %147 : vector<8x256xf32>
    %cst_105 = arith.constant dense<0.000000e+00> : vector<8xf32>
    %151 = vector.multi_reduction <add>, %150, %cst_105 [1] : vector<8x256xf32> to vector<8xf32>
    %152 = vector.shape_cast %151 : vector<8xf32> to vector<8x1xf32>
    %cst_106 = arith.constant 3.906250e-03 : f32
    %153 = vector.broadcast %cst_106 : f32 to vector<8x1xf32>
    %154 = arith.mulf %149, %153 : vector<8x1xf32>
    %cst_107 = arith.constant 3.906250e-03 : f32
    %155 = vector.broadcast %cst_107 : f32 to vector<8x1xf32>
    %156 = arith.mulf %152, %155 : vector<8x1xf32>
    %157 = arith.mulf %154, %154 : vector<8x1xf32>
    %158 = arith.subf %156, %157 : vector<8x1xf32>
    %cst_108 = arith.constant 0.000000e+00 : f32
    %159 = vector.broadcast %cst_108 : f32 to vector<8x1xf32>
    %160 = arith.maximumf %158, %159 : vector<8x1xf32>
    %161 = vector.broadcast %154 : vector<8x1xf32> to vector<8x256xf32>
    %162 = arith.subf %147, %161 : vector<8x256xf32>
    %cst_109 = arith.constant 9.99999974E-6 : f32
    %163 = vector.broadcast %cst_109 : f32 to vector<8x1xf32>
    %164 = arith.addf %160, %163 : vector<8x1xf32>
    %165 = math.rsqrt %164 : vector<8x1xf32>
    %166 = vector.broadcast %165 : vector<8x1xf32> to vector<8x256xf32>
    %167 = arith.mulf %162, %166 : vector<8x256xf32>
    %cst_110 = arith.constant 0.000000e+00 : f32
    %168 = vector.broadcast %cst_110 : f32 to vector<8x256xf32>
    %169 = arith.maximumf %167, %168 : vector<8x256xf32>
    %c0_111 = arith.constant 0 : index
    %c0_112 = arith.constant 0 : index
    %c0_113 = arith.constant 0 : index
    %170 = vector.load %arg6[%c0_111, %c0_112, %c0_113] : memref<2x8x256xf32, #tpu.memory_space<vmem>>, vector<1x8x256xf32>
    %171 = vector.shape_cast %170 : vector<1x8x256xf32> to vector<8x256xf32>
    %172 = vector.shape_cast %169 : vector<8x256xf32> to vector<1x8x256xf32>
    tpu.vector_store %arg6[%c0_111, %c0_112, %c0_113], %172 {strides = array<i32>} : memref<2x8x256xf32, #tpu.memory_space<vmem>>, vector<1x8x256xf32>,
    %c1 = arith.constant 1 : index
    %c0_114 = arith.constant 0 : index
    %c0_115 = arith.constant 0 : index
    %173 = vector.load %arg4[%c1, %c0_114, %c0_115] : memref<2x8x128xf32, #tpu.memory_space<vmem>>, vector<1x8x128xf32>
    %174 = vector.shape_cast %173 : vector<1x8x128xf32> to vector<8x128xf32>
    %c0_116 = arith.constant 0 : index
    %c0_117 = arith.constant 0 : index
    %175 = vector.load %arg1[%c0_116, %c0_117] : memref<128x256xf32, #tpu.memory_space<vmem>>, vector<128x256xf32>
    %cst_118 = arith.constant dense<0.000000e+00> : vector<8x256xf32>
    %176 = tpu.matmul %174, %175, %cst_118 {dimension_numbers = #tpu.dot_dimension_numbers<[1], [0], [0], [1], [0, 0, 1, 1], [], []>} : vector<8x128xf32>, vector<128x256xf32>, vector<8x256xf32> -> vector<8x256xf32>
    %c0_119 = arith.constant 0 : index
    %c128_120 = arith.constant 128 : index
    %177 = vector.load %arg7[%c0_119, %c128_120] : memref<16x512xf32, #tpu.memory_space<vmem>>, vector<8x256xf32>
    tpu.vector_store %arg7[%c0_119, %c128_120], %176 {strides = array<i32>} : memref<16x512xf32, #tpu.memory_space<vmem>>, vector<8x256xf32>,
    %c1_121 = arith.constant 1 : index
    %c0_122 = arith.constant 0 : index
    %c0_123 = arith.constant 0 : index
    %178 = vector.load %arg5[%c1_121, %c0_122, %c0_123] : memref<2x8x256xf32, #tpu.memory_space<vmem>>, vector<1x8x256xf32>
    %179 = vector.shape_cast %178 : vector<1x8x256xf32> to vector<8x256xf32>
    %c8_124 = arith.constant 8 : index
    %c128_125 = arith.constant 128 : index
    %180 = vector.load %arg7[%c8_124, %c128_125] : memref<16x512xf32, #tpu.memory_space<vmem>>, vector<8x256xf32>
    tpu.vector_store %arg7[%c8_124, %c128_125], %179 {strides = array<i32>} : memref<16x512xf32, #tpu.memory_space<vmem>>, vector<8x256xf32>,
    %c0_126 = arith.constant 0 : index
    %c111_127 = arith.constant 111 : index
    %181 = vector.load %arg7[%c0_126, %c111_127] : memref<16x512xf32, #tpu.memory_space<vmem>>, vector<16x256xf32>
    %cst_128 = arith.constant 0.000000e+00 : f32
    %182 = vector.shape_cast %18 : vector<1x256xi1> to vector<1x256xi1>
    %183 = vector.broadcast %182 : vector<1x256xi1> to vector<16x256xi1>
    %184 = vector.broadcast %cst_128 : f32 to vector<16x256xf32>
    %185 = arith.select %183, %181, %184 : vector<16x256xi1>, vector<16x256xf32>
    %c8_129 = arith.constant 8 : index
    %c0_130 = arith.constant 0 : index
    %186 = vector.load %arg8[%c8_129, %c0_130] : memref<152x256xf32, #tpu.memory_space<vmem>>, vector<16x256xf32>
    tpu.vector_store %arg8[%c8_129, %c0_130], %185 {strides = array<i32>} : memref<152x256xf32, #tpu.memory_space<vmem>>, vector<16x256xf32>,
    %c0_131 = arith.constant 0 : index
    %c112_132 = arith.constant 112 : index
    %187 = vector.load %arg7[%c0_131, %c112_132] : memref<16x512xf32, #tpu.memory_space<vmem>>, vector<16x256xf32>
    %c24_133 = arith.constant 24 : index
    %c0_134 = arith.constant 0 : index
    %188 = vector.load %arg8[%c24_133, %c0_134] : memref<152x256xf32, #tpu.memory_space<vmem>>, vector<16x256xf32>
    tpu.vector_store %arg8[%c24_133, %c0_134], %187 {strides = array<i32>} : memref<152x256xf32, #tpu.memory_space<vmem>>, vector<16x256xf32>,
    %c0_135 = arith.constant 0 : index
    %c113_136 = arith.constant 113 : index
    %189 = vector.load %arg7[%c0_135, %c113_136] : memref<16x512xf32, #tpu.memory_space<vmem>>, vector<16x256xf32>
    %cst_137 = arith.constant 0.000000e+00 : f32
    %190 = vector.shape_cast %20 : vector<1x256xi1> to vector<1x256xi1>
    %191 = vector.broadcast %190 : vector<1x256xi1> to vector<16x256xi1>
    %192 = vector.broadcast %cst_137 : f32 to vector<16x256xf32>
    %193 = arith.select %191, %189, %192 : vector<16x256xi1>, vector<16x256xf32>
    %c40_138 = arith.constant 40 : index
    %c0_139 = arith.constant 0 : index
    %194 = vector.load %arg8[%c40_138, %c0_139] : memref<152x256xf32, #tpu.memory_space<vmem>>, vector<16x256xf32>
    tpu.vector_store %arg8[%c40_138, %c0_139], %193 {strides = array<i32>} : memref<152x256xf32, #tpu.memory_space<vmem>>, vector<16x256xf32>,
    %c0_140 = arith.constant 0 : index
    %c127_141 = arith.constant 127 : index
    %195 = vector.load %arg7[%c0_140, %c127_141] : memref<16x512xf32, #tpu.memory_space<vmem>>, vector<16x256xf32>
    %cst_142 = arith.constant 0.000000e+00 : f32
    %196 = vector.shape_cast %18 : vector<1x256xi1> to vector<1x256xi1>
    %197 = vector.broadcast %196 : vector<1x256xi1> to vector<16x256xi1>
    %198 = vector.broadcast %cst_142 : f32 to vector<16x256xf32>
    %199 = arith.select %197, %195, %198 : vector<16x256xi1>, vector<16x256xf32>
    %c56_143 = arith.constant 56 : index
    %c0_144 = arith.constant 0 : index
    %200 = vector.load %arg8[%c56_143, %c0_144] : memref<152x256xf32, #tpu.memory_space<vmem>>, vector<16x256xf32>
    tpu.vector_store %arg8[%c56_143, %c0_144], %199 {strides = array<i32>} : memref<152x256xf32, #tpu.memory_space<vmem>>, vector<16x256xf32>,
    %c0_145 = arith.constant 0 : index
    %c128_146 = arith.constant 128 : index
    %201 = vector.load %arg7[%c0_145, %c128_146] : memref<16x512xf32, #tpu.memory_space<vmem>>, vector<16x256xf32>
    %c72_147 = arith.constant 72 : index
    %c0_148 = arith.constant 0 : index
    %202 = vector.load %arg8[%c72_147, %c0_148] : memref<152x256xf32, #tpu.memory_space<vmem>>, vector<16x256xf32>
    tpu.vector_store %arg8[%c72_147, %c0_148], %201 {strides = array<i32>} : memref<152x256xf32, #tpu.memory_space<vmem>>, vector<16x256xf32>,
    %c0_149 = arith.constant 0 : index
    %c129_150 = arith.constant 129 : index
    %203 = vector.load %arg7[%c0_149, %c129_150] : memref<16x512xf32, #tpu.memory_space<vmem>>, vector<16x256xf32>
    %cst_151 = arith.constant 0.000000e+00 : f32
    %204 = vector.shape_cast %20 : vector<1x256xi1> to vector<1x256xi1>
    %205 = vector.broadcast %204 : vector<1x256xi1> to vector<16x256xi1>
    %206 = vector.broadcast %cst_151 : f32 to vector<16x256xf32>
    %207 = arith.select %205, %203, %206 : vector<16x256xi1>, vector<16x256xf32>
    %c88_152 = arith.constant 88 : index
    %c0_153 = arith.constant 0 : index
    %208 = vector.load %arg8[%c88_152, %c0_153] : memref<152x256xf32, #tpu.memory_space<vmem>>, vector<16x256xf32>
    tpu.vector_store %arg8[%c88_152, %c0_153], %207 {strides = array<i32>} : memref<152x256xf32, #tpu.memory_space<vmem>>, vector<16x256xf32>,
    %c0_154 = arith.constant 0 : index
    %c143_155 = arith.constant 143 : index
    %209 = vector.load %arg7[%c0_154, %c143_155] : memref<16x512xf32, #tpu.memory_space<vmem>>, vector<16x256xf32>
    %cst_156 = arith.constant 0.000000e+00 : f32
    %210 = vector.shape_cast %18 : vector<1x256xi1> to vector<1x256xi1>
    %211 = vector.broadcast %210 : vector<1x256xi1> to vector<16x256xi1>
    %212 = vector.broadcast %cst_156 : f32 to vector<16x256xf32>
    %213 = arith.select %211, %209, %212 : vector<16x256xi1>, vector<16x256xf32>
    %c104_157 = arith.constant 104 : index
    %c0_158 = arith.constant 0 : index
    %214 = vector.load %arg8[%c104_157, %c0_158] : memref<152x256xf32, #tpu.memory_space<vmem>>, vector<16x256xf32>
    tpu.vector_store %arg8[%c104_157, %c0_158], %213 {strides = array<i32>} : memref<152x256xf32, #tpu.memory_space<vmem>>, vector<16x256xf32>,
    %c0_159 = arith.constant 0 : index
    %c144_160 = arith.constant 144 : index
    %215 = vector.load %arg7[%c0_159, %c144_160] : memref<16x512xf32, #tpu.memory_space<vmem>>, vector<16x256xf32>
    %c120_161 = arith.constant 120 : index
    %c0_162 = arith.constant 0 : index
    %216 = vector.load %arg8[%c120_161, %c0_162] : memref<152x256xf32, #tpu.memory_space<vmem>>, vector<16x256xf32>
    tpu.vector_store %arg8[%c120_161, %c0_162], %215 {strides = array<i32>} : memref<152x256xf32, #tpu.memory_space<vmem>>, vector<16x256xf32>,
    %c0_163 = arith.constant 0 : index
    %c145_164 = arith.constant 145 : index
    %217 = vector.load %arg7[%c0_163, %c145_164] : memref<16x512xf32, #tpu.memory_space<vmem>>, vector<16x256xf32>
    %cst_165 = arith.constant 0.000000e+00 : f32
    %218 = vector.shape_cast %20 : vector<1x256xi1> to vector<1x256xi1>
    %219 = vector.broadcast %218 : vector<1x256xi1> to vector<16x256xi1>
    %220 = vector.broadcast %cst_165 : f32 to vector<16x256xf32>
    %221 = arith.select %219, %217, %220 : vector<16x256xi1>, vector<16x256xf32>
    %c136_166 = arith.constant 136 : index
    %c0_167 = arith.constant 0 : index
    %222 = vector.load %arg8[%c136_166, %c0_167] : memref<152x256xf32, #tpu.memory_space<vmem>>, vector<16x256xf32>
    tpu.vector_store %arg8[%c136_166, %c0_167], %221 {strides = array<i32>} : memref<152x256xf32, #tpu.memory_space<vmem>>, vector<16x256xf32>,
    %c0_168 = arith.constant 0 : index
    %c0_169 = arith.constant 0 : index
    %223 = vector.load %arg2[%c0_168, %c0_169] : memref<8x152xf32, #tpu.memory_space<vmem>>, vector<8x152xf32>
    %c0_170 = arith.constant 0 : index
    %c0_171 = arith.constant 0 : index
    %224 = vector.load %arg8[%c0_170, %c0_171] : memref<152x256xf32, #tpu.memory_space<vmem>>, vector<152x256xf32>
    %cst_172 = arith.constant dense<0.000000e+00> : vector<8x256xf32>
    %225 = tpu.matmul %223, %224, %cst_172 {dimension_numbers = #tpu.dot_dimension_numbers<[1], [0], [0], [1], [0, 0, 1, 1], [], []>} : vector<8x152xf32>, vector<152x256xf32>, vector<8x256xf32> -> vector<8x256xf32>
    %cst_173 = arith.constant dense<0.000000e+00> : vector<8xf32>
    %226 = vector.multi_reduction <add>, %225, %cst_173 [1] : vector<8x256xf32> to vector<8xf32>
    %227 = vector.shape_cast %226 : vector<8xf32> to vector<8x1xf32>
    %228 = arith.mulf %225, %225 : vector<8x256xf32>
    %cst_174 = arith.constant dense<0.000000e+00> : vector<8xf32>
    %229 = vector.multi_reduction <add>, %228, %cst_174 [1] : vector<8x256xf32> to vector<8xf32>
    %230 = vector.shape_cast %229 : vector<8xf32> to vector<8x1xf32>
    %cst_175 = arith.constant 3.906250e-03 : f32
    %231 = vector.broadcast %cst_175 : f32 to vector<8x1xf32>
    %232 = arith.mulf %227, %231 : vector<8x1xf32>
    %cst_176 = arith.constant 3.906250e-03 : f32
    %233 = vector.broadcast %cst_176 : f32 to vector<8x1xf32>
    %234 = arith.mulf %230, %233 : vector<8x1xf32>
    %235 = arith.mulf %232, %232 : vector<8x1xf32>
    %236 = arith.subf %234, %235 : vector<8x1xf32>
    %cst_177 = arith.constant 0.000000e+00 : f32
    %237 = vector.broadcast %cst_177 : f32 to vector<8x1xf32>
    %238 = arith.maximumf %236, %237 : vector<8x1xf32>
    %239 = vector.broadcast %232 : vector<8x1xf32> to vector<8x256xf32>
    %240 = arith.subf %225, %239 : vector<8x256xf32>
    %cst_178 = arith.constant 9.99999974E-6 : f32
    %241 = vector.broadcast %cst_178 : f32 to vector<8x1xf32>
    %242 = arith.addf %238, %241 : vector<8x1xf32>
    %243 = math.rsqrt %242 : vector<8x1xf32>
    %244 = vector.broadcast %243 : vector<8x1xf32> to vector<8x256xf32>
    %245 = arith.mulf %240, %244 : vector<8x256xf32>
    %cst_179 = arith.constant 0.000000e+00 : f32
    %246 = vector.broadcast %cst_179 : f32 to vector<8x256xf32>
    %247 = arith.maximumf %245, %246 : vector<8x256xf32>
    %c0_180 = arith.constant 0 : index
    %c128_181 = arith.constant 128 : index
    %248 = vector.load %arg7[%c0_180, %c128_181] : memref<16x512xf32, #tpu.memory_space<vmem>>, vector<8x256xf32>
    tpu.vector_store %arg7[%c0_180, %c128_181], %247 {strides = array<i32>} : memref<16x512xf32, #tpu.memory_space<vmem>>, vector<8x256xf32>,
    %c0_182 = arith.constant 0 : index
    %c111_183 = arith.constant 111 : index
    %249 = vector.load %arg7[%c0_182, %c111_183] : memref<16x512xf32, #tpu.memory_space<vmem>>, vector<8x256xf32>
    %cst_184 = arith.constant 0.000000e+00 : f32
    %250 = vector.shape_cast %18 : vector<1x256xi1> to vector<1x256xi1>
    %251 = vector.broadcast %250 : vector<1x256xi1> to vector<8x256xi1>
    %252 = vector.broadcast %cst_184 : f32 to vector<8x256xf32>
    %253 = arith.select %251, %249, %252 : vector<8x256xi1>, vector<8x256xf32>
    %c8_185 = arith.constant 8 : index
    %c0_186 = arith.constant 0 : index
    %254 = vector.load %arg8[%c8_185, %c0_186] : memref<152x256xf32, #tpu.memory_space<vmem>>, vector<8x256xf32>
    tpu.vector_store %arg8[%c8_185, %c0_186], %253 {strides = array<i32>} : memref<152x256xf32, #tpu.memory_space<vmem>>, vector<8x256xf32>,
    %c0_187 = arith.constant 0 : index
    %c112_188 = arith.constant 112 : index
    %255 = vector.load %arg7[%c0_187, %c112_188] : memref<16x512xf32, #tpu.memory_space<vmem>>, vector<8x256xf32>
    %c16_189 = arith.constant 16 : index
    %c0_190 = arith.constant 0 : index
    %256 = vector.load %arg8[%c16_189, %c0_190] : memref<152x256xf32, #tpu.memory_space<vmem>>, vector<8x256xf32>
    tpu.vector_store %arg8[%c16_189, %c0_190], %255 {strides = array<i32>} : memref<152x256xf32, #tpu.memory_space<vmem>>, vector<8x256xf32>,
    %c0_191 = arith.constant 0 : index
    %c113_192 = arith.constant 113 : index
    %257 = vector.load %arg7[%c0_191, %c113_192] : memref<16x512xf32, #tpu.memory_space<vmem>>, vector<8x256xf32>
    %cst_193 = arith.constant 0.000000e+00 : f32
    %258 = vector.shape_cast %20 : vector<1x256xi1> to vector<1x256xi1>
    %259 = vector.broadcast %258 : vector<1x256xi1> to vector<8x256xi1>
    %260 = vector.broadcast %cst_193 : f32 to vector<8x256xf32>
    %261 = arith.select %259, %257, %260 : vector<8x256xi1>, vector<8x256xf32>
    %c24_194 = arith.constant 24 : index
    %c0_195 = arith.constant 0 : index
    %262 = vector.load %arg8[%c24_194, %c0_195] : memref<152x256xf32, #tpu.memory_space<vmem>>, vector<8x256xf32>
    tpu.vector_store %arg8[%c24_194, %c0_195], %261 {strides = array<i32>} : memref<152x256xf32, #tpu.memory_space<vmem>>, vector<8x256xf32>,
    %c0_196 = arith.constant 0 : index
    %c127_197 = arith.constant 127 : index
    %263 = vector.load %arg7[%c0_196, %c127_197] : memref<16x512xf32, #tpu.memory_space<vmem>>, vector<8x256xf32>
    %cst_198 = arith.constant 0.000000e+00 : f32
    %264 = vector.shape_cast %18 : vector<1x256xi1> to vector<1x256xi1>
    %265 = vector.broadcast %264 : vector<1x256xi1> to vector<8x256xi1>
    %266 = vector.broadcast %cst_198 : f32 to vector<8x256xf32>
    %267 = arith.select %265, %263, %266 : vector<8x256xi1>, vector<8x256xf32>
    %c32_199 = arith.constant 32 : index
    %c0_200 = arith.constant 0 : index
    %268 = vector.load %arg8[%c32_199, %c0_200] : memref<152x256xf32, #tpu.memory_space<vmem>>, vector<8x256xf32>
    tpu.vector_store %arg8[%c32_199, %c0_200], %267 {strides = array<i32>} : memref<152x256xf32, #tpu.memory_space<vmem>>, vector<8x256xf32>,
    %c0_201 = arith.constant 0 : index
    %c128_202 = arith.constant 128 : index
    %269 = vector.load %arg7[%c0_201, %c128_202] : memref<16x512xf32, #tpu.memory_space<vmem>>, vector<8x256xf32>
    %c40_203 = arith.constant 40 : index
    %c0_204 = arith.constant 0 : index
    %270 = vector.load %arg8[%c40_203, %c0_204] : memref<152x256xf32, #tpu.memory_space<vmem>>, vector<8x256xf32>
    tpu.vector_store %arg8[%c40_203, %c0_204], %269 {strides = array<i32>} : memref<152x256xf32, #tpu.memory_space<vmem>>, vector<8x256xf32>,
    %c0_205 = arith.constant 0 : index
    %c129_206 = arith.constant 129 : index
    %271 = vector.load %arg7[%c0_205, %c129_206] : memref<16x512xf32, #tpu.memory_space<vmem>>, vector<8x256xf32>
    %cst_207 = arith.constant 0.000000e+00 : f32
    %272 = vector.shape_cast %20 : vector<1x256xi1> to vector<1x256xi1>
    %273 = vector.broadcast %272 : vector<1x256xi1> to vector<8x256xi1>
    %274 = vector.broadcast %cst_207 : f32 to vector<8x256xf32>
    %275 = arith.select %273, %271, %274 : vector<8x256xi1>, vector<8x256xf32>
    %c48_208 = arith.constant 48 : index
    %c0_209 = arith.constant 0 : index
    %276 = vector.load %arg8[%c48_208, %c0_209] : memref<152x256xf32, #tpu.memory_space<vmem>>, vector<8x256xf32>
    tpu.vector_store %arg8[%c48_208, %c0_209], %275 {strides = array<i32>} : memref<152x256xf32, #tpu.memory_space<vmem>>, vector<8x256xf32>,
    %c0_210 = arith.constant 0 : index
    %c143_211 = arith.constant 143 : index
    %277 = vector.load %arg7[%c0_210, %c143_211] : memref<16x512xf32, #tpu.memory_space<vmem>>, vector<8x256xf32>
    %cst_212 = arith.constant 0.000000e+00 : f32
    %278 = vector.shape_cast %18 : vector<1x256xi1> to vector<1x256xi1>
    %279 = vector.broadcast %278 : vector<1x256xi1> to vector<8x256xi1>
    %280 = vector.broadcast %cst_212 : f32 to vector<8x256xf32>
    %281 = arith.select %279, %277, %280 : vector<8x256xi1>, vector<8x256xf32>
    %c56_213 = arith.constant 56 : index
    %c0_214 = arith.constant 0 : index
    %282 = vector.load %arg8[%c56_213, %c0_214] : memref<152x256xf32, #tpu.memory_space<vmem>>, vector<8x256xf32>
    tpu.vector_store %arg8[%c56_213, %c0_214], %281 {strides = array<i32>} : memref<152x256xf32, #tpu.memory_space<vmem>>, vector<8x256xf32>,
    %c0_215 = arith.constant 0 : index
    %c144_216 = arith.constant 144 : index
    %283 = vector.load %arg7[%c0_215, %c144_216] : memref<16x512xf32, #tpu.memory_space<vmem>>, vector<8x256xf32>
    %c64_217 = arith.constant 64 : index
    %c0_218 = arith.constant 0 : index
    %284 = vector.load %arg8[%c64_217, %c0_218] : memref<152x256xf32, #tpu.memory_space<vmem>>, vector<8x256xf32>
    tpu.vector_store %arg8[%c64_217, %c0_218], %283 {strides = array<i32>} : memref<152x256xf32, #tpu.memory_space<vmem>>, vector<8x256xf32>,
    %c0_219 = arith.constant 0 : index
    %c145_220 = arith.constant 145 : index
    %285 = vector.load %arg7[%c0_219, %c145_220] : memref<16x512xf32, #tpu.memory_space<vmem>>, vector<8x256xf32>
    %cst_221 = arith.constant 0.000000e+00 : f32
    %286 = vector.shape_cast %20 : vector<1x256xi1> to vector<1x256xi1>
    %287 = vector.broadcast %286 : vector<1x256xi1> to vector<8x256xi1>
    %288 = vector.broadcast %cst_221 : f32 to vector<8x256xf32>
    %289 = arith.select %287, %285, %288 : vector<8x256xi1>, vector<8x256xf32>
    %c72_222 = arith.constant 72 : index
    %c0_223 = arith.constant 0 : index
    %290 = vector.load %arg8[%c72_222, %c0_223] : memref<152x256xf32, #tpu.memory_space<vmem>>, vector<8x256xf32>
    tpu.vector_store %arg8[%c72_222, %c0_223], %289 {strides = array<i32>} : memref<152x256xf32, #tpu.memory_space<vmem>>, vector<8x256xf32>,
    %c0_224 = arith.constant 0 : index
    %c0_225 = arith.constant 0 : index
    %291 = vector.load %arg3[%c0_224, %c0_225] : memref<8x80xf32, #tpu.memory_space<vmem>>, vector<8x80xf32>
    %c0_226 = arith.constant 0 : index
    %c0_227 = arith.constant 0 : index
    %292 = vector.load %arg8[%c0_226, %c0_227] : memref<152x256xf32, #tpu.memory_space<vmem>>, vector<80x256xf32>
    %cst_228 = arith.constant dense<0.000000e+00> : vector<8x256xf32>
    %293 = tpu.matmul %291, %292, %cst_228 {dimension_numbers = #tpu.dot_dimension_numbers<[1], [0], [0], [1], [0, 0, 1, 1], [], []>} : vector<8x80xf32>, vector<80x256xf32>, vector<8x256xf32> -> vector<8x256xf32>
    %cst_229 = arith.constant dense<0.000000e+00> : vector<8xf32>
    %294 = vector.multi_reduction <add>, %293, %cst_229 [1] : vector<8x256xf32> to vector<8xf32>
    %295 = vector.shape_cast %294 : vector<8xf32> to vector<8x1xf32>
    %296 = arith.mulf %293, %293 : vector<8x256xf32>
    %cst_230 = arith.constant dense<0.000000e+00> : vector<8xf32>
    %297 = vector.multi_reduction <add>, %296, %cst_230 [1] : vector<8x256xf32> to vector<8xf32>
    %298 = vector.shape_cast %297 : vector<8xf32> to vector<8x1xf32>
    %cst_231 = arith.constant 3.906250e-03 : f32
    %299 = vector.broadcast %cst_231 : f32 to vector<8x1xf32>
    %300 = arith.mulf %295, %299 : vector<8x1xf32>
    %cst_232 = arith.constant 3.906250e-03 : f32
    %301 = vector.broadcast %cst_232 : f32 to vector<8x1xf32>
    %302 = arith.mulf %298, %301 : vector<8x1xf32>
    %303 = arith.mulf %300, %300 : vector<8x1xf32>
    %304 = arith.subf %302, %303 : vector<8x1xf32>
    %cst_233 = arith.constant 0.000000e+00 : f32
    %305 = vector.broadcast %cst_233 : f32 to vector<8x1xf32>
    %306 = arith.maximumf %304, %305 : vector<8x1xf32>
    %307 = vector.broadcast %300 : vector<8x1xf32> to vector<8x256xf32>
    %308 = arith.subf %293, %307 : vector<8x256xf32>
    %cst_234 = arith.constant 9.99999974E-6 : f32
    %309 = vector.broadcast %cst_234 : f32 to vector<8x1xf32>
    %310 = arith.addf %306, %309 : vector<8x1xf32>
    %311 = math.rsqrt %310 : vector<8x1xf32>
    %312 = vector.broadcast %311 : vector<8x1xf32> to vector<8x256xf32>
    %313 = arith.mulf %308, %312 : vector<8x256xf32>
    %cst_235 = arith.constant 0.000000e+00 : f32
    %314 = vector.broadcast %cst_235 : f32 to vector<8x256xf32>
    %315 = arith.maximumf %313, %314 : vector<8x256xf32>
    %c1_236 = arith.constant 1 : index
    %c0_237 = arith.constant 0 : index
    %c0_238 = arith.constant 0 : index
    %316 = vector.load %arg6[%c1_236, %c0_237, %c0_238] : memref<2x8x256xf32, #tpu.memory_space<vmem>>, vector<1x8x256xf32>
    %317 = vector.shape_cast %316 : vector<1x8x256xf32> to vector<8x256xf32>
    %318 = vector.shape_cast %315 : vector<8x256xf32> to vector<1x8x256xf32>
    tpu.vector_store %arg6[%c1_236, %c0_237, %c0_238], %318 {strides = array<i32>} : memref<2x8x256xf32, #tpu.memory_space<vmem>>, vector<1x8x256xf32>,
    return
  }
  func.func @transform_0(%arg0: i32) -> (i32, i32) {
    %c0_i32 = arith.constant 0 : i32
    %c0_i32_0 = arith.constant 0 : i32
    %c0_i32_1 = arith.constant 0 : i32
    return %c0_i32, %c0_i32_0 : i32, i32
  }
  func.func @transform_1(%arg0: i32) -> (i32, i32) {
    %c0_i32 = arith.constant 0 : i32
    %c0_i32_0 = arith.constant 0 : i32
    %c0_i32_1 = arith.constant 0 : i32
    return %c0_i32, %c0_i32_0 : i32, i32
  }
  func.func @transform_2(%arg0: i32) -> (i32, i32) {
    %c0_i32 = arith.constant 0 : i32
    %c0_i32_0 = arith.constant 0 : i32
    %c0_i32_1 = arith.constant 0 : i32
    return %c0_i32, %c0_i32_0 : i32, i32
  }
  func.func @transform_3(%arg0: i32) -> (i32, i32, i32) {
    %c0_i32 = arith.constant 0 : i32
    %c0_i32_0 = arith.constant 0 : i32
    %c0_i32_1 = arith.constant 0 : i32
    return %arg0, %c0_i32, %c0_i32_0 : i32, i32, i32
  }
  func.func @transform_4(%arg0: i32) -> (i32, i32, i32) {
    %c0_i32 = arith.constant 0 : i32
    %c0_i32_0 = arith.constant 0 : i32
    %c0_i32_1 = arith.constant 0 : i32
    return %arg0, %c0_i32, %c0_i32_0 : i32, i32, i32
  }
  func.func @transform_5(%arg0: i32) -> (i32, i32, i32) {
    %c0_i32 = arith.constant 0 : i32
    %c0_i32_0 = arith.constant 0 : i32
    %c0_i32_1 = arith.constant 0 : i32
    return %arg0, %c0_i32, %c0_i32_0 : i32, i32, i32
  }
}

</mosaic_0001>

<bundles_post_ra>
// kernel: tpu_custom_call.1
= control target key start
LH: loop header
LB: loop body
LE: loop exit
PB: predicated region body
PF: predicated region fallthrough
CT: control target
= control target key end

     0   :  { %10 = vsyncpa [#allocation5], 0  ;;  %s3150_s0 = inlined_call_operand.hbm [shape: f32[128,256], index: 0, kind: input, shape index: {}]   ;;  %s3151_s1 = inlined_call_operand.hbm [shape: f32[8,152], index: 1, kind: input, shape index: {}]   ;;  %s3152_s2 = inlined_call_operand.hbm [shape: f32[8,80], index: 2, kind: input, shape index: {}]   ;;  %s3153_s3 = inlined_call_operand.hbm [shape: f32[2,8,128], index: 3, kind: input, shape index: {}]   ;;  %s3154_s4 = inlined_call_operand.hbm [shape: f32[2,8,256], index: 4, kind: input, shape index: {}]   ;;  %s3155_s5 = inlined_call_operand.hbm [shape: f32[2,8,256], index: 5, kind: output, shape index: {}]  }
   0x1   :  { %11 = vsyncpa [#allocation8], 0 }
   0x2   :  { %12 = vsyncpa [#allocation11], 0  ;;  %s32_s20 = sshll.u32 %s3151_s1, 4  ;;  %s33_s20 = int_to_ptr.hbm [resolvable:$true] %s32_s20 }
   0x3   :  { %13 = vsyncpa [#allocation6], 0  ;;  %s2188_s21 = smov [#allocation7]   ;;  %s53_s25 = sshll.u32 %s3153_s3, 4  ;;  %s54_s25 = int_to_ptr.hbm [resolvable:$true] %s53_s25 }
   0x4   :  { %s34_s22 = sshll.u32 %s2188_s21, 4  ;;  %s2189_s26 = smov [#allocation10]   ;;  %s35_s22 = int_to_ptr.vmem [resolvable:$true] %s34_s22 }
   0x5   :  { %37 = dma.hbm_to_vmem [thread:$0]  %s33_s20, 256, %s35_s22, [#allocation8]  }
   0x6   :  { %s55_s27 = sshll.u32 %s2189_s26, 4  ;;  %s2190_s28 = smov 128   ;;  %s56_s27 = int_to_ptr.vmem [resolvable:$true] %s55_s27 }
   0x7   :  { %s2191_s29 = smov 8   ;;  %s18_s1 = sshll.u32 %s3150_s0, 4  ;;  %s19_s1 = int_to_ptr.hbm [resolvable:$true] %s18_s1 }
   0x8   :  { %61 = dma.hbm_to_vmem [thread:$0]  %s54_s25, 256, %s56_s27, [#allocation11], %s2190_s28, %s2190_s28, %s2191_s29  }
   0x9   :  { %s2192_s7 = smov [#allocation4]   ;;  %s43_s3 = sshll.u32 %s3152_s2, 4  ;;  %s44_s3 = int_to_ptr.hbm [resolvable:$true] %s43_s3 }
   0xa   :  { %s20_s8 = sshll.u32 %s2192_s7, 4  ;;  %s2193_s11 = smov 256   ;;  %s21_s8 = int_to_ptr.vmem [resolvable:$true] %s20_s8 }
   0xb   :  { %s2194_s12 = smov 16   ;;  %s2195_s13 = smov [#allocation9]  }
   0xc   :  { %26 = dma.hbm_to_vmem [thread:$0]  %s19_s1, 4096, %s21_s8, [#allocation5], %s2193_s11, %s2193_s11, %s2194_s12  }
   0xd   :  { %s45_s14 = sshll.u32 %s2195_s13, 4  ;;  %s66_s0 = sshll.u32 %s3154_s4, 4  ;;  %s46_s14 = int_to_ptr.vmem [resolvable:$true] %s45_s14  ;;  %s67_s0 = int_to_ptr.hbm [resolvable:$true] %s66_s0 }
   0xe   :  { %48 = dma.hbm_to_vmem [thread:$0]  %s44_s3, 128, %s46_s14, [#allocation8]  }
   0xf   :  { %s2196_s17 = smov [#allocation12]  }
  0x10   :  { %s68_s18 = sshll.u32 %s2196_s17, 4  ;;  %s69_s18 = int_to_ptr.vmem [resolvable:$true] %s68_s18 }
  0x11   :  { %74 = dma.hbm_to_vmem [thread:$0]  %s67_s0, 512, %s69_s18, [#allocation11], %s2193_s11, %s2193_s11, %s2194_s12  }
  0x12   :  { %2180 = dma.done.wait [#allocation5], 4096  }
  0x13   :  { %2181 = vsyncadd [#allocation5], 4294963200 }
  0x14   :  { %2182 = dma.done.wait [#allocation8], 384  }
  0x15   :  { %2183 = vsyncadd [#allocation8], 4294966912 }
  0x16   :  { %2184 = dma.done.wait [#allocation11], 768  }
  0x17   :  { %2185 = vsyncadd [#allocation11], 4294966528  ;;  %v2258_v0 = vld [vmem:[#allocation4 + $0xf0] sm:$0xff]  ;;  %v2260_v1 = vld [vmem:[#allocation4 + $0xf8] sm:$0xff]  ;;  %v3156_v6 = vmov 0.0   ;;  %s2198_s2 = smov 112   ;;  %v95_v60 = vlaneseq }
  0x18   :  { %v2262_v2 = vld [vmem:[#allocation4 + $0xe0] sm:$0xff]  ;;  %165 = vmatpush.msra.mxu0 %v2258_v0  ;;  %185 = vmatpush.msra.mxu1 %v2260_v1  ;;  %v2266_v3 = vld [vmem:[#allocation4 + $0xe8] sm:$0xff]  ;;  %v2268_v4 = vld [vmem:[#allocation4 + $0xd0] sm:$0xff]  ;;  %s2199_s4 = smov 113   ;;  %s2200_s19 = smov 127   ;;  %vm493_vm0 = vcmask 916480  }
  0x19   :  { %v2270_v5 = vld [vmem:[#allocation4 + $0xd8] sm:$0xff]  ;;  %485 = vrot.lane.b32.xlu0 %v3156_v6, %s2198_s2  ;;  %v2276_v7 = vld [vmem:[#allocation4 + $0xc0] sm:$0xff]  ;;  %v2278_v8 = vld [vmem:[#allocation4 + $0xc8] sm:$0xff]  ;;  %1894 = vrot.lane.b32.xlu2 %v3156_v6, %s2199_s4  ;;  %s2201_s20 = smov 1   ;;  %s2202_s21 = smov 15   ;;  %v96_v63 = vand.u32 127, %v95_v60 }
  0x1a   :  { %166 = vmatpush.msra.mxu0 %v2262_v2  ;;  %186 = vmatpush.msra.mxu1 %v2266_v3  ;;  %v2284_v9 = vld [vmem:[#allocation4 + $0xb0] sm:$0xff]  ;;  %v2286_v10 = vld [vmem:[#allocation4 + $0xb8] sm:$0xff]  ;;  %v2290_v11 = vld [vmem:[#allocation4 + $0xa0] sm:$0xff]  ;;  %s2203_s22 = smov 17   ;;  %s2204_s23 = smov 111   ;;  %vm452_vm1 = vcmask 924672  }
  0x1b   :  { %v2292_v12 = vld [vmem:[#allocation4 + $0xa8] sm:$0xff]  ;;  %v2296_v13 = vld [vmem:[#allocation4 + $0x90] sm:$0xff]  ;;  %v2298_v14 = vld [vmem:[#allocation4 + $0x98] sm:$0xff]  ;;  %vm411_vm4 = vcmask 1039360   ;;  %vm530_vm7 = vcmask 908288   ;;  %vm362_vm8 = vcmask 7168  }
  0x1c   :  { %167 = vmatpush.msra.mxu0 %v2268_v4  ;;  %187 = vmatpush.msra.mxu1 %v2270_v5  ;;  %v2304_v15 = vld [vmem:[#allocation12] sm:$0xff]  ;;  %v2306_v16 = vld [vmem:[#allocation12 + $0x8] sm:$0xff]  ;;  %v2308_v17 = vld [vmem:[#allocation4 + $0x80] sm:$0xff]  ;;  %vm321_vm9 = vcmask 121856   ;;  %vm280_vm10 = vcmask 130048   ;;  %vm239_vm11 = vcmask 138240  }
  0x1d   :  { %v2310_v18 = vld [vmem:[#allocation4 + $0x88] sm:$0xff]  ;;  %446 = vrot.lane.b32.xlu1 %v2304_v15, %s2199_s4  ;;  %v2318_v19 = vld [vmem:[#allocation4 + $0x70] sm:$0xff]  ;;  %v2320_v20 = vld [vmem:[#allocation4 + $0x78] sm:$0xff]  ;;  %v1918_v36 = vpack.i.bf16 0.0, %v2306_v16  ;;  %v1913_v37 = vpack.i.bf16 %v2304_v15, %v3156_v6  ;;  %v1943_v41 = vpack.i.bf16 %v2306_v16, %v2304_v15  ;;  %vm587_vm12 = vcmask 195584   ;;  %s2206_s24 = smov [#allocation13]  }
  0x1e   :  { %168 = vmatpush.msra.mxu0 %v2276_v7  ;;  %188 = vmatpush.msra.mxu1 %v2278_v8  ;;  %v2324_v21 = vld [vmem:[#allocation4 + $0x60] sm:$0xff]  ;;  %v2326_v22 = vld [vmem:[#allocation4 + $0x68] sm:$0xff]  ;;  %v2330_v23 = vld [vmem:[#allocation4 + $0x50] sm:$0xff]  ;;  %s1777_s25 = sshll.u32 %s2206_s24, 4  ;;  %s1779_s28 = sshll.u32 %s3155_s5, 4  ;;  %s1778_s25 = int_to_ptr.vmem [resolvable:$true] %s1777_s25  ;;  %s1780_s28 = int_to_ptr.hbm [resolvable:$true] %s1779_s28 }
  0x1f   :  { %v2332_v24 = vld [vmem:[#allocation4 + $0x58] sm:$0xff]  ;;  %v2338_v25 = vld [vmem:[#allocation4 + $0x40] sm:$0xff]  ;;  %v2340_v26 = vld [vmem:[#allocation4 + $0x48] sm:$0xff] }
  0x20   :  { %169 = vmatpush.msra.mxu0 %v2284_v9  ;;  %189 = vmatpush.msra.mxu1 %v2286_v10  ;;  %3170 = vst [vmem:[#allocation18_spill] sm:$0xff] %v2340_v26  ;;  %v2348_v27 = vld [vmem:[#allocation4 + $0x30] sm:$0xff]  ;;  %v2350_v28 = vld [vmem:[#allocation4 + $0x38] sm:$0xff]  ;;  %v2354_v29 = vld [vmem:[#allocation4 + $0x20] sm:$0xff] }
  0x21   :  { %1899 = vrot.lane.b32.xlu0 %v3156_v6, %s2200_s19  ;;  %407 = vrot.lane.b32.xlu2 %v2306_v16, %s2200_s19  ;;  %3171 = vst [vmem:[#allocation19_spill] sm:$0xff] %v2350_v28  ;;  %v2356_v30 = vld [vmem:[#allocation4 + $0x28] sm:$0xff]  ;;  %v2360_v31 = vld [vmem:[#allocation4 + $0x10] sm:$0xff]  ;;  %v2362_v32 = vld [vmem:[#allocation4 + $0x18] sm:$0xff] }
  0x22   :  { %170 = vmatpush.msra.mxu0 %v2290_v11  ;;  %190 = vmatpush.msra.mxu1 %v2292_v12  ;;  %3172 = vst [vmem:[#allocation20_spill] sm:$0xff] %v2356_v30  ;;  %v2368_v33 = vld [vmem:[#allocation4] sm:$0xff]  ;;  %v2370_v34 = vld [vmem:[#allocation4 + $0x8] sm:$0xff]  ;;  %v132_v35 = vld [vmem:[#allocation10] sm:$0xff] }
  0x23   :  { %3173 = vst [vmem:[#allocation21_spill] sm:$0xff] %v2360_v31 }
  0x24   :  { %171 = vmatpush.msra.mxu0 %v2296_v13  ;;  %191 = vmatpush.msra.mxu1 %v2298_v14  ;;  %3174 = vst [vmem:[#allocation22_spill] sm:$0xff] %v2362_v32 }
  0x25   :  { %448 = vrot.lane.b32.xlu1 %v2306_v16, %s2199_s4  ;;  %3175 = vst [vmem:[#allocation23_spill] sm:$0xff] %v2368_v33 }
  0x26   :  { %172 = vmatpush.msra.mxu0 %v2308_v17  ;;  %192 = vmatpush.msra.mxu1 %v2310_v18  ;;  %3176 = vst [vmem:[#allocation24_spill] sm:$0xff] %v2370_v34 }
  0x28   :  { %173 = vmatpush.msra.mxu0 %v2318_v19  ;;  %193 = vmatpush.msra.mxu1 %v2320_v20 }
  0x29   :  { %1904 = vrot.lane.b32.xlu0 %v3156_v6, %s2201_s20  ;;  %360 = vrot.lane.b32.xlu2 %v2306_v16, %s2201_s20 }
  0x2a   :  { %174 = vmatpush.msra.mxu0 %v2324_v21  ;;  %194 = vmatpush.msra.mxu1 %v2326_v22 }
  0x2c   :  { %175 = vmatpush.msra.mxu0 %v2330_v23  ;;  %195 = vmatpush.msra.mxu1 %v2332_v24 }
  0x2d   :  { %405 = vrot.lane.b32.xlu1 %v2304_v15, %s2200_s19 }
  0x2e   :  { %176 = vmatpush.msra.mxu0 %v2338_v25  ;;  %196 = vmatpush.msra.mxu1 %v2340_v26 }
  0x30   :  { %177 = vmatpush.msra.mxu0 %v2348_v27  ;;  %197 = vmatpush.msra.mxu1 %v2350_v28 }
  0x31   :  { %317 = vrot.lane.b32.xlu0 %v2304_v15, %s2202_s21  ;;  %1909 = vrot.lane.b32.xlu2 %v3156_v6, %s2202_s21 }
  0x32   :  { %178 = vmatpush.msra.mxu0 %v2354_v29  ;;  %198 = vmatpush.msra.mxu1 %v2356_v30 }
  0x34   :  { %179 = vmatpush.msra.mxu0 %v2360_v31  ;;  %199 = vmatpush.msra.mxu1 %v2362_v32 }
  0x35   :  { %358 = vrot.lane.b32.xlu1 %v2304_v15, %s2201_s20 }
  0x36   :  { %180 = vmatpush.msra.mxu0 %v2368_v33  ;;  %200 = vmatpush.msra.mxu1 %v2370_v34 }
  0x37   :  { %181 = vmatmul.f32.vlgmr.msra.gmra.mxu0 %v132_v35  ;;  %201 = vmatmul.f32.vlgmr.msra.gmra.mxu1 %v132_v35  ;;  %v97_v35 = vadd.s32 128, %v96_v63 }
  0x39   :  { %237 = vrot.lane.b32.xlu0 %v2306_v16, %s2203_s22  ;;  %1919 = vrot.lane.b32.xlu2 %v1918_v36, %s2194_s12 }
  0x3d   :  { %319 = vrot.lane.b32.xlu1 %v2306_v16, %s2202_s21 }
  0x41   :  { %524 = vrot.lane.b32.xlu0 %v2304_v15, %s2204_s23  ;;  %235 = vrot.lane.b32.xlu2 %v2304_v15, %s2203_s22 }
  0x45   :  { %1914 = vrot.lane.b32.xlu1 %v1913_v37, %s2194_s12 }
  0x4d   :  { %1924 = vrot.lane.b32.xlu1 %v3156_v6, %s2203_s22 }
  0x73   :  { %v1895_v42 = vpop.permute.xlu2 %1894 }
  0x74   :  { %v1896_v34 = vunpack.i.l.bf16 %v1895_v42 }
  0x7b   :  { %v408_v44 = vpop.permute.xlu2 %407 }
  0x83   :  { %v2440_v47 = vpop.permute.xlu2 %360 }
  0x8b   :  { %v486_v46 = vpop.permute.xlu0 %485  ;;  %v2442_v50 = vpop.permute.xlu2 %1909 }
  0x8f   :  { %v447_v43 = vpop.permute.xlu1 %446 }
  0x93   :  { %v1900_v49 = vpop.permute.xlu0 %1899  ;;  %v2448_v53 = vpop.permute.xlu2 %1919 }
  0x97   :  { %v449_v45 = vpop.permute.xlu1 %448 }
  0x9b   :  { %v2446_v52 = vpop.permute.xlu0 %1904  ;;  %v2454_v56 = vpop.permute.xlu2 %235 }
  0x9f   :  { %v406_v48 = vpop.permute.xlu1 %405 }
  0xa3   :  { %v2452_v55 = vpop.permute.xlu0 %317 }
  0xa7   :  { %v2444_v51 = vpop.permute.xlu1 %358 }
  0xab   :  { %v2458_v58 = vpop.permute.xlu0 %237 }
  0xaf   :  { %v2450_v54 = vpop.permute.xlu1 %319 }
  0xb3   :  { %v525_v62 = vpop.permute.xlu0 %524 }
  0xb4   :  { %v2397_v38 = vpop.f32.mrf.mxu0  ;;  %v2399_v39 = vpop.f32.mrf.mxu1 }
  0xb5   :  { %399 = vrot.lane.b32.xlu1 %v2397_v38, %s2200_s19  ;;  %440 = vrot.lane.b32.xlu2 %v2397_v38, %s2199_s4  ;;  %v1928_v40 = vpack.i.bf16 %v2399_v39, %v2397_v38 }
  0xb7   :  { %1929 = vrot.lane.b32.xlu0 %v1928_v40, %s2198_s2  ;;  %v2456_v57 = vpop.permute.xlu1 %1914 }
  0xbd   :  { %354 = vrot.lane.b32.xlu1 %v2399_v39, %s2201_s20  ;;  %401 = vrot.lane.b32.xlu2 %v2399_v39, %s2200_s19 }
  0xbf   :  { %442 = vrot.lane.b32.xlu0 %v2399_v39, %s2199_s4  ;;  %v2460_v61 = vpop.permute.xlu1 %1924 }
  0xc5   :  { %526 = vrot.lane.b32.xlu1 %v2306_v16, %s2204_s23  ;;  %1934 = vrot.lane.b32.xlu2 %v3156_v6, %s2204_s23 }
  0xc7   :  { %352 = vrot.lane.b32.xlu0 %v2397_v38, %s2201_s20 }
  0xcd   :  { %229 = vrot.lane.b32.xlu1 %v2397_v38, %s2203_s22  ;;  %311 = vrot.lane.b32.xlu2 %v2397_v38, %s2202_s21 }
  0xcf   :  { %313 = vrot.lane.b32.xlu0 %v2399_v39, %s2202_s21 }
  0xd5   :  { %520 = vrot.lane.b32.xlu1 %v2399_v39, %s2204_s23  ;;  %231 = vrot.lane.b32.xlu2 %v2399_v39, %s2203_s22 }
  0xd7   :  { %1939 = vrot.lane.b32.xlu0 %v1928_v40, %s2194_s12  ;;  %v102_v40 = vand.u32 15, %v96_v63  ;;  %v455_v63 = vsel %vm452_vm1, %v447_v43, %v449_v45 }
  0xd9   :  { %vm2464_vm2 = vcmp.gt.s32.totalorder %v102_v40, 0  ;;  %vm2482_vm5 = vcmp.lt.s32.totalorder %v102_v40, 15 }
  0xdd   :  { %1944 = vrot.lane.b32.xlu2 %v1943_v41, %s2198_s2  ;;  %v109_v41 = vand.u32 15, %v97_v35  ;;  %v456_v35 = vsel %vm452_vm1, %v449_v45, %v1896_v34 }
  0xdf   :  { %518 = vrot.lane.b32.xlu0 %v2397_v38, %s2204_s23  ;;  %vm2468_vm3 = vcmp.gt.s32.totalorder %v109_v41, 0  ;;  %vm2486_vm6 = vcmp.lt.s32.totalorder %v109_v41, 15 }
  0xe7   :  { %491 = vrot.lane.b32.xlu0 %v3156_v6, %s2198_s2 }
  0xef   :  { %853 = vrot.lane.b32.xlu0 %v3156_v6, %s2204_s23 }
 0x10f   :  { %v441_v59 = vpop.permute.xlu2 %440 }
 0x117   :  { %v402_v36 = vpop.permute.xlu2 %401 }
 0x127   :  { %v400_v37 = vpop.permute.xlu1 %399 }
 0x128   :  { %v412_v41 = vsel %vm411_vm4, %v400_v37, %v402_v36 }
 0x129   :  { %v1930_v6 = vpop.permute.xlu0 %1929 }
 0x12a   :  { %v1932_v32 = vunpack.i.h.bf16 %v1930_v6  ;;  %v1931_v30 = vunpack.i.l.bf16 %v1930_v6  ;;  %v2474_v6 = vpop.permute.xlu2 %1934 }
 0x12b   :  { %v1936_v45 = vunpack.i.l.bf16 %v2474_v6 }
 0x12c   :  { %v494_v33 = vsel %vm493_vm0, %v1931_v30, %v1932_v32  ;;  %v495_v28 = vsel %vm493_vm0, %v1932_v32, %v486_v46  ;;  %v1897_v30 = vunpack.i.h.bf16 %v1895_v42  ;;  %v1901_v32 = vunpack.i.l.bf16 %v1900_v49 }
 0x12d   :  { %591 = vmatpush.msra.mxu2 %v494_v33  ;;  %631 = vmatpush.msra.mxu3 %v495_v28  ;;  %v1902_v42 = vunpack.i.h.bf16 %v1900_v49 }
 0x12e   :  { %v415_v40 = vsel %vm411_vm4, %v408_v44, %v1901_v32 }
 0x12f   :  { %v355_v26 = vpop.permute.xlu1 %354  ;;  %1802 = vmatpush.msk.msra.mxu2 %vm2464_vm2, %v455_v63  ;;  %1814 = vmatpush.msk.msra.mxu3 %vm2468_vm3, %v456_v35  ;;  %v413_v63 = vsel %vm411_vm4, %v402_v36, %v1902_v42  ;;  %v1911_v36 = vunpack.i.l.bf16 %v2442_v50 }
 0x131   :  { %v443_v46 = vpop.permute.xlu0 %442 }
 0x132   :  { %v453_v33 = vsel %vm452_vm1, %v441_v59, %v443_v46  ;;  %v454_v28 = vsel %vm452_vm1, %v443_v46, %v1897_v30  ;;  %v414_v59 = vsel %vm411_vm4, %v406_v48, %v408_v44  ;;  %v1906_v44 = vunpack.i.l.bf16 %v2446_v52  ;;  %v312_v30 = vpop.permute.xlu2 %311 }
 0x133   :  { %1803 = vmatpush.msk.msra.mxu2 %vm2464_vm2, %v453_v33  ;;  %1815 = vmatpush.msk.msra.mxu3 %vm2468_vm3, %v454_v28  ;;  %v1916_v46 = vunpack.i.l.bf16 %v2456_v57  ;;  %v1917_v33 = vunpack.i.h.bf16 %v2456_v57 }
 0x134   :  { %v365_v32 = vsel %vm362_vm8, %v1906_v44, %v2444_v51 }
 0x135   :  { %1804 = vmatpush.msk.msra.mxu2 %vm2482_vm5, %v414_v59  ;;  %1816 = vmatpush.msk.msra.mxu3 %vm2486_vm6, %v415_v40  ;;  %v283_v57 = vsel %vm280_vm10, %v1916_v46, %v1917_v33 }
 0x137   :  { %v527_v35 = vpop.permute.xlu1 %526  ;;  %1805 = vmatpush.msk.msra.mxu2 %vm2482_vm5, %v412_v41  ;;  %1817 = vmatpush.msk.msra.mxu3 %vm2486_vm6, %v413_v63  ;;  %v1922_v63 = vunpack.i.h.bf16 %v2448_v53 }
 0x138   :  { %v533_v48 = vsel %vm530_vm7, %v525_v62, %v527_v35  ;;  %v534_v49 = vsel %vm530_vm7, %v527_v35, %v1936_v45  ;;  %v1907_v62 = vunpack.i.h.bf16 %v2446_v52  ;;  %v1912_v52 = vunpack.i.h.bf16 %v2442_v50 }
 0x139   :  { %1812 = vmatpush.msk.msrb.mxu1 %vm2482_vm5, %v533_v48  ;;  %v353_v37 = vpop.permute.xlu0 %352  ;;  %596 = vmatpush.msra.mxu2 %v2304_v15  ;;  %v366_v15 = vsel %vm362_vm8, %v2444_v51, %v2440_v47  ;;  %v324_v47 = vsel %vm321_vm9, %v1911_v36, %v2452_v55  ;;  %v1921_v51 = vunpack.i.l.bf16 %v2448_v53  ;;  %v1926_v35 = vunpack.i.l.bf16 %v2460_v61 }
 0x13a   :  { %636 = vmatpush.msra.mxu3 %v2306_v16  ;;  %1824 = vmatpush.msk.msrb.mxu0 %vm2486_vm6, %v534_v49  ;;  %v363_v16 = vsel %vm362_vm8, %v1907_v62, %v353_v37  ;;  %v322_v50 = vsel %vm321_vm9, %v1912_v52, %v312_v30  ;;  %v232_v45 = vpop.permute.xlu2 %231  ;;  %v243_v53 = vsel %vm239_vm11, %v2454_v56, %v2458_v58  ;;  %v3168_v52 = vmov 1.0  }
 0x13b   :  { %597 = vmatpush.msra.mxu2 %v2397_v38  ;;  %v242_v36 = vsel %vm239_vm11, %v1926_v35, %v2454_v56  ;;  %v2580_v56 = vld [vmem:[#allocation7] sm:$0xff] }
 0x13c   :  { %637 = vmatpush.msra.mxu3 %v2399_v39  ;;  %v364_v39 = vsel %vm362_vm8, %v353_v37, %v355_v26  ;;  %v325_v26 = vsel %vm321_vm9, %v2452_v55, %v2450_v54  ;;  %v284_v54 = vsel %vm280_vm10, %v1917_v33, %v1921_v51  ;;  %v1937_v55 = vunpack.i.h.bf16 %v2474_v6  ;;  %v2600_v51 = vld [vmem:[#allocation12 + $0x10] sm:$0xff] }
 0x13d   :  { %1806 = vmatpush.msk.msra.mxu2 %vm2464_vm2, %v365_v32  ;;  %v1927_v37 = vunpack.i.h.bf16 %v2460_v61  ;;  %1263 = vrot.lane.b32.xlu2 %v2600_v51, %s2199_s4 }
 0x13e   :  { %1818 = vmatpush.msk.msra.mxu3 %vm2468_vm3, %v366_v15 }
 0x13f   :  { %v230_v38 = vpop.permute.xlu1 %229  ;;  %1807 = vmatpush.msk.msra.mxu2 %vm2464_vm2, %v363_v16 }
 0x140   :  { %1819 = vmatpush.msk.msra.mxu3 %vm2468_vm3, %v364_v39  ;;  %v240_v15 = vsel %vm239_vm11, %v1927_v37, %v230_v38  ;;  %v241_v61 = vsel %vm239_vm11, %v230_v38, %v232_v45  ;;  %v2587_v38 = vld [vmem:[#allocation7 + $0x8] sm:$0xff] }
 0x141   :  { %v314_v28 = vpop.permute.xlu0 %313  ;;  %1808 = vmatpush.msk.msra.mxu2 %vm2482_vm5, %v324_v47 }
 0x142   :  { %1820 = vmatpush.msk.msra.mxu3 %vm2486_vm6, %v325_v26  ;;  %v323_v42 = vsel %vm321_vm9, %v312_v30, %v314_v28  ;;  %v1945_v49 = vpop.permute.xlu2 %1944 }
 0x143   :  { %1809 = vmatpush.msk.msra.mxu2 %vm2482_vm5, %v322_v50  ;;  %v1947_v62 = vunpack.i.h.bf16 %v1945_v49  ;;  %v1946_v32 = vunpack.i.l.bf16 %v1945_v49 }
 0x144   :  { %1821 = vmatpush.msk.msra.mxu3 %vm2486_vm6, %v323_v42 }
 0x145   :  { %602 = vmatpush.msra.mxu2 %v283_v57  ;;  %v496_v39 = vsel %vm493_vm0, %v1946_v32, %v1947_v62  ;;  %1223 = vrot.lane.b32.xlu2 %v2600_v51, %s2200_s19 }
 0x146   :  { %642 = vmatpush.msra.mxu3 %v284_v54 }
 0x147   :  { %v521_v59 = vpop.permute.xlu1 %520 }
 0x148   :  { %v532_v40 = vsel %vm530_vm7, %v521_v59, %v1937_v55 }
 0x149   :  { %1825 = vmatpush.msk.msrb.mxu0 %vm2486_vm6, %v532_v40  ;;  %v1940_v41 = vpop.permute.xlu0 %1939 }
 0x14a   :  { %v1942_v44 = vunpack.i.h.bf16 %v1940_v41  ;;  %v1941_v48 = vunpack.i.l.bf16 %v1940_v41 }
 0x14c   :  { %v281_v30 = vsel %vm280_vm10, %v1922_v63, %v1941_v48  ;;  %v282_v6 = vsel %vm280_vm10, %v1941_v48, %v1942_v44 }
 0x14d   :  { %603 = vmatpush.msra.mxu2 %v281_v30  ;;  %643 = vmatpush.msra.mxu3 %v282_v6 }
 0x14f   :  { %1810 = vmatpush.msk.msra.mxu2 %vm2464_vm2, %v242_v36  ;;  %1822 = vmatpush.msk.msra.mxu3 %vm2468_vm3, %v243_v53 }
 0x151   :  { %v519_v16 = vpop.permute.xlu0 %518  ;;  %1811 = vmatpush.msk.msra.mxu2 %vm2464_vm2, %v240_v15  ;;  %1823 = vmatpush.msk.msra.mxu3 %vm2468_vm3, %v241_v61 }
 0x152   :  { %v531_v58 = vsel %vm530_vm7, %v519_v16, %v521_v59 }
 0x153   :  { %1813 = vmatpush.msk.msrb.mxu1 %vm2482_vm5, %v531_v58  ;;  %606 = vmatpush.msra.mxu2 %v3168_v52 }
 0x154   :  { %646 = vmatpush.msra.mxu3 %v3168_v52  ;;  %607 = vmatmul.f32.vlgmr.msra.gmra.mxu2 %v2580_v56 }
 0x155   :  { %626 = vmatpush.msrb.mxu1 %v496_v39  ;;  %647 = vmatmul.f32.vlgmr.msra.gmra.mxu3 %v2580_v56 }
 0x156   :  { %994 = vmatpush.msrb.mxu3 %v2258_v0  ;;  %1794 = vmatmul.msk.f32.vlgmr.msrb.gmra.mxu1 %vm587_vm12, %v2587_v38  ;;  %v3185_v0 = vmov 0.0  }
 0x157   :  { %1949 = vrot.lane.b32.xlu0 %v3185_v0, %s2199_s4  ;;  %1954 = vrot.lane.b32.xlu1 %v3185_v0, %s2200_s19 }
 0x158   :  { %995 = vmatpush.msrb.mxu3 %v2262_v2  ;;  %v3186_v2 = vld [vmem:[#allocation18_spill] sm:$0xff] }
 0x159   :  { %v492_v46 = vpop.permute.xlu0 %491 }
 0x15a   :  { %v497_v47 = vsel %vm493_vm0, %v1947_v62, %v492_v46  ;;  %996 = vmatpush.msrb.mxu3 %v2268_v4  ;;  %v3188_v4 = vld [vmem:[#allocation19_spill] sm:$0xff] }
 0x15b   :  { %666 = vmatpush.msrb.mxu0 %v497_v47 }
 0x15c   :  { %997 = vmatpush.msrb.mxu3 %v2276_v7  ;;  %1795 = vmatmul.msk.f32.vlgmr.msrb.gmra.mxu0 %vm587_vm12, %v2587_v38  ;;  %v3189_v7 = vld [vmem:[#allocation23_spill] sm:$0xff] }
 0x15d   :  { %1014 = vmatpush.msra.mxu0 %v2260_v1  ;;  %v2616_v1 = vld [vmem:[#allocation12 + $0x18] sm:$0xff] }
 0x15e   :  { %998 = vmatpush.msrb.mxu3 %v2284_v9  ;;  %1179 = vrot.lane.b32.xlu2 %v2616_v1, %s2201_s20  ;;  %v3191_v9 = vld [vmem:[#allocation22_spill] sm:$0xff] }
 0x15f   :  { %1015 = vmatpush.msra.mxu0 %v2266_v3  ;;  %1265 = vrot.lane.b32.xlu0 %v2616_v1, %s2199_s4  ;;  %v3187_v3 = vld [vmem:[#allocation21_spill] sm:$0xff] }
 0x160   :  { %999 = vmatpush.msrb.mxu3 %v2290_v11  ;;  %1261 = vrot.lane.b32.xlu1 %v3185_v0, %s2199_s4 }
 0x161   :  { %1016 = vmatpush.msra.mxu0 %v2270_v5  ;;  %v961_v5 = vld [vmem:[#allocation10 + $0x8] sm:$0xff] }
 0x162   :  { %1000 = vmatpush.msrb.mxu3 %v2296_v13 }
 0x163   :  { %1017 = vmatpush.msra.mxu0 %v2278_v8  ;;  %v3190_v8 = vld [vmem:[#allocation20_spill] sm:$0xff] }
 0x164   :  { %1001 = vmatpush.msrb.mxu3 %v2308_v17 }
 0x165   :  { %1018 = vmatpush.msra.mxu0 %v2286_v10  ;;  %v3192_v10 = vld [vmem:[#allocation24_spill] sm:$0xff] }
 0x166   :  { %1002 = vmatpush.msrb.mxu3 %v2318_v19  ;;  %1139 = vrot.lane.b32.xlu2 %v2616_v1, %s2202_s21 }
 0x167   :  { %1019 = vmatpush.msra.mxu0 %v2292_v12  ;;  %1225 = vrot.lane.b32.xlu0 %v2616_v1, %s2200_s19 }
 0x168   :  { %1003 = vmatpush.msrb.mxu3 %v2324_v21  ;;  %1339 = vrot.lane.b32.xlu1 %v2600_v51, %s2204_s23 }
 0x169   :  { %1020 = vmatpush.msra.mxu0 %v2298_v14  ;;  %v2675_v14 = vpop.permute.xlu0 %853 }
 0x16a   :  { %1004 = vmatpush.msrb.mxu3 %v2330_v23 }
 0x16b   :  { %1021 = vmatpush.msra.mxu0 %v2310_v18  ;;  %v1978_v18 = vpack.i.bf16 %v2616_v1, %v2600_v51 }
 0x16c   :  { %1005 = vmatpush.msrb.mxu3 %v2338_v25 }
 0x16d   :  { %1022 = vmatpush.msra.mxu0 %v2320_v20 }
 0x16e   :  { %1006 = vmatpush.msrb.mxu3 %v2348_v27  ;;  %1959 = vrot.lane.b32.xlu2 %v3185_v0, %s2201_s20 }
 0x16f   :  { %1023 = vmatpush.msra.mxu0 %v2326_v22  ;;  %1221 = vrot.lane.b32.xlu0 %v3185_v0, %s2200_s19 }
 0x170   :  { %1007 = vmatpush.msrb.mxu3 %v2354_v29 }
 0x171   :  { %1024 = vmatpush.msra.mxu0 %v2332_v24 }
 0x172   :  { %1008 = vmatpush.msrb.mxu3 %v3187_v3 }
 0x173   :  { %1025 = vmatpush.msra.mxu0 %v3186_v2 }
 0x174   :  { %1009 = vmatpush.msrb.mxu3 %v3189_v7 }
 0x175   :  { %1026 = vmatpush.msra.mxu0 %v3188_v4  ;;  %1010 = vmatmul.f32.vlgmr.msrb.gmra.mxu3 %v961_v5 }
 0x177   :  { %1027 = vmatpush.msra.mxu0 %v3190_v8  ;;  %1177 = vrot.lane.b32.xlu0 %v2600_v51, %s2201_s20 }
 0x179   :  { %1028 = vmatpush.msra.mxu0 %v3191_v9 }
 0x17b   :  { %1029 = vmatpush.msra.mxu0 %v3192_v10 }
 0x17c   :  { %1030 = vmatmul.f32.vlgmr.msra.gmra.mxu0 %v961_v5 }
 0x17f   :  { %1137 = vrot.lane.b32.xlu0 %v2600_v51, %s2202_s21 }
 0x187   :  { %1341 = vrot.lane.b32.xlu0 %v2616_v1, %s2204_s23 }
 0x197   :  { %v1264_v17 = vpop.permute.xlu2 %1263 }
 0x19f   :  { %v1224_v21 = vpop.permute.xlu2 %1223 }
 0x1b8   :  { %v1180_v28 = vpop.permute.xlu2 %1179 }
 0x1c0   :  { %v2700_v59 = vpop.permute.xlu2 %1139 }
 0x1c8   :  { %v2704_v41 = vpop.permute.xlu2 %1959 }
 0x1c9   :  { %v2684_v20 = vpop.permute.xlu0 %1949  ;;  %v1962_v63 = vunpack.i.h.bf16 %v2704_v41  ;;  %v2713_v30 = vpop.permute.xlu1 %1954 }
 0x1ca   :  { %v1952_v23 = vunpack.i.h.bf16 %v2684_v20  ;;  %v1957_v6 = vunpack.i.h.bf16 %v2713_v30 }
 0x1d1   :  { %v1266_v27 = vpop.permute.xlu0 %1265 }
 0x1d2   :  { %v2692_v29 = vsel %vm452_vm1, %v1264_v17, %v1266_v27  ;;  %v2695_v33 = vsel %vm452_vm1, %v1266_v27, %v1952_v23  ;;  %v2732_v36 = vpop.permute.xlu1 %1261 }
 0x1d3   :  { %v628_v24 = vpop.f32.mrf.mxu1 }
 0x1d7   :  { %v608_v25 = vpop.f32.mrf.mxu2 }
 0x1d8   :  { %v648_v19 = vpop.f32.mrf.mxu3  ;;  %v629_v26 = vadd.f32 %v628_v24, %v608_v25 }
 0x1d9   :  { %v668_v11 = vpop.f32.mrf.mxu0  ;;  %v1226_v57 = vpop.permute.xlu0 %1225 }
 0x1da   :  { %v669_v50 = vadd.f32 %v668_v11, %v648_v19  ;;  %v674_v42 = vmul.f32 %v629_v26, %v629_v26  ;;  %v2698_v54 = vsel %vm411_vm4, %v1224_v21, %v1226_v57  ;;  %v2717_v37 = vsel %vm411_vm4, %v1226_v57, %v1957_v6  ;;  %v2734_v53 = vpop.permute.xlu1 %1339 }
 0x1dc   :  { %v675_v45 = vmul.f32 %v669_v50, %v669_v50  ;;  %v671_v49 = vadd.f32 %v669_v50, %v629_v26 }
 0x1de   :  { %v676_v55 = vadd.f32 %v675_v45, %v674_v42 }
 0x1e1   :  { %v2702_v40 = vpop.permute.xlu0 %1221 }
 0x1e9   :  { %v1178_v35 = vpop.permute.xlu0 %1177 }
 0x1ea   :  { %v2708_v44 = vsel %vm362_vm8, %v1962_v63, %v1178_v35  ;;  %v2711_v48 = vsel %vm362_vm8, %v1178_v35, %v1180_v28 }
 0x1f1   :  { %v2806_v35 = vpop.permute.xlu0 %1137 }
 0x1f8   :  { %v2686_v22 = vpop.f32.mrf.mxu3 }
 0x1f9   :  { %v2663_v12 = vpop.f32.mrf.mxu0  ;;  %v1993_v63 = vpack.i.bf16 %v2686_v22, %v3185_v0 }
 0x1fa   :  { %1133 = vrot.lane.b32.xlu0 %v2663_v12, %s2202_s21  ;;  %1259 = vrot.lane.b32.xlu2 %v2663_v12, %s2199_s4  ;;  %v1963_v13 = vpack.i.bf16 0.0, %v2663_v12 }
 0x1fc   :  { %1964 = vrot.lane.b32.xlu1 %v1963_v13, %s2198_s2 }
 0x202   :  { %1969 = vrot.lane.b32.xlu0 %v3185_v0, %s2202_s21 }
 0x204   :  { %1219 = vrot.lane.b32.xlu1 %v2663_v12, %s2200_s19 }
 0x20a   :  { %1979 = vrot.lane.b32.xlu0 %v1978_v18, %s2198_s2 }
 0x20c   :  { %1173 = vrot.lane.b32.xlu1 %v2663_v12, %s2201_s20 }
 0x212   :  { %1257 = vrot.lane.b32.xlu0 %v2686_v22, %s2199_s4 }
 0x223   :  { %677 = vadd.xlane.f32.xlu2 %v676_v55 }
 0x236   :  { %672 = vadd.xlane.f32.xlu1 %v671_v49  ;;  %v2810_v49 = vpop.permute.xlu0 %1341 }
 0x23b   :  { %1974 = vrot.lane.b32.xlu2 %v1978_v18, %s2194_s12 }
 0x243   :  { %1171 = vrot.lane.b32.xlu2 %v2686_v22, %s2201_s20 }
 0x24b   :  { %1333 = vrot.lane.b32.xlu2 %v2686_v22, %s2204_s23 }
 0x24f   :  { %1335 = vrot.lane.b32.xlu1 %v2663_v12, %s2204_s23 }
 0x254   :  { %v2738_v32 = vpop.permute.xlu2 %1259 }
 0x257   :  { %1169 = vrot.lane.b32.xlu1 %v3185_v0, %s2201_s20 }
 0x25f   :  { %1217 = vrot.lane.b32.xlu1 %v2686_v22, %s2200_s19 }
 0x267   :  { %1131 = vrot.lane.b32.xlu1 %v2686_v22, %s2202_s21 }
 0x26c   :  { %v2814_v6 = vpop.permute.xlu0 %1133 }
 0x26e   :  { %v2736_v62 = vpop.permute.xlu1 %1964 }
 0x276   :  { %v2740_v61 = vpop.permute.xlu1 %1219 }
 0x27e   :  { %v1174_v58 = vpop.permute.xlu1 %1173 }
 0x296   :  { %v678_v15 = vpop.xlane.xlu2 %677 }
 0x297   :  { %v680_v3 = vmul.f32 0.00390625, %v678_v15 }
 0x29e   :  { %v2742_v16 = vpop.permute.xlu2 %1974 }
 0x2a6   :  { %v1172_v39 = vpop.permute.xlu2 %1171 }
 0x2a7   :  { %v2745_v46 = vsel %vm362_vm8, %v1172_v39, %v1174_v58  ;;  %v2820_v58 = vpop.permute.xlu0 %1969 }
 0x2a9   :  { %v673_v47 = vpop.xlane.xlu1 %672 }
 0x2aa   :  { %v679_v2 = vmul.f32 0.00390625, %v673_v47 }
 0x2ac   :  { %v681_v4 = vmul.f32 %v679_v2, %v679_v2  ;;  %v684_v23 = vsub.f32 %v629_v26, %v679_v2  ;;  %v685_v24 = vsub.f32 %v669_v50, %v679_v2 }
 0x2ae   :  { %v682_v5 = vsub.f32 %v680_v3, %v681_v4  ;;  %v2818_v15 = vpop.permute.xlu2 %1333 }
 0x2af   :  { %v2826_v47 = vpop.permute.xlu0 %1979 }
 0x2b0   :  { %v683_v7 = vmax.f32 %v682_v5, 0.0 }
 0x2b2   :  { %v686_v8 = vadd.f32 1e-05, %v683_v7 }
 0x2b4   :  { %2028 = vrsqrt.f32 %v686_v8  ;;  %vm693_vm14 = vweird.f32 %v686_v8 }
 0x2b7   :  { %v2834_v4 = vpop.permute.xlu0 %1257 }
 0x2ba   :  { %v2029_v9 = vpop.eup %2028 }
 0x2bb   :  { %v688_v10 = vmul.f32 %v2029_v9, %v686_v8  ;;  %vm694_vm13 = vweird.f32 %v2029_v9 }
 0x2bc   :  { %vm695_vm15 = vmor %vm693_vm14, %vm694_vm13  ;;  %vm884_vm13 = vcmask 654336  }
 0x2bd   :  { %v689_v11 = vmul.f32 %v2029_v9, %v688_v10 }
 0x2bf   :  { %v690_v17 = vmul.f32 0.5, %v689_v11 }
 0x2c1   :  { %v691_v18 = vsub.f32 1.5, %v690_v17  ;;  %v2747_v19 = vpop.permute.xlu1 %1335 }
 0x2c3   :  { %v692_v21 = vmul.f32 %v2029_v9, %v691_v18 }
 0x2c5   :  { %v696_v25 = vsel %vm695_vm15, %v2029_v9, %v692_v21  ;;  %v3167_v21 = vunpack.i.l.bf16 %v2742_v16 }
 0x2c6   :  { %v697_v27 = vmul.f32 %v696_v25, %v684_v23  ;;  %v698_v28 = vmul.f32 %v696_v25, %v685_v24 }
 0x2c8   :  { %v2749_v42 = vmax.f32 %v697_v27, 0.0  ;;  %v2751_v45 = vmax.f32 %v698_v28, 0.0  ;;  %v3165_v27 = vunpack.i.l.bf16 %v2736_v62 }
 0x2c9   :  { %v1170_v57 = vpop.permute.xlu1 %1169 }
 0x2ca   :  { %v2754_v55 = vsel %vm362_vm8, %v1170_v57, %v1172_v39  ;;  %793 = vrot.lane.b32.xlu2 %v2751_v45, %s2200_s19  ;;  %851 = vrot.lane.b32.xlu0 %v2751_v45, %s2204_s23  ;;  %v1988_v26 = vpack.i.bf16 %v2751_v45, %v2749_v42  ;;  %v1983_v50 = vpack.i.bf16 0.0, %v2751_v45 }
 0x2cc   :  { %1989 = vrot.lane.b32.xlu1 %v1988_v26, %s2194_s12 }
 0x2d1   :  { %v2830_v2 = vpop.permute.xlu1 %1217 }
 0x2d2   :  { %751 = vrot.lane.b32.xlu2 %v2751_v45, %s2202_s21  ;;  %1984 = vrot.lane.b32.xlu0 %v1983_v50, %s2198_s2 }
 0x2d4   :  { %1999 = vrot.lane.b32.xlu1 %v1963_v13, %s2194_s12  ;;  %v2003_v13 = vpack.i.bf16 %v2749_v42, %v2686_v22 }
 0x2d9   :  { %v2838_v7 = vpop.permute.xlu1 %1131 }
 0x2da   :  { %713 = vrot.lane.b32.xlu2 %v2751_v45, %s2203_s22  ;;  %813 = vrot.lane.b32.xlu0 %v2751_v45, %s2199_s4 }
 0x2dc   :  { %1063 = vrot.lane.b32.xlu1 %v2616_v1, %s2203_s22 }
 0x2e2   :  { %1994 = vrot.lane.b32.xlu2 %v1993_v63, %s2194_s12  ;;  %769 = vrot.lane.b32.xlu0 %v2749_v42, %s2201_s20 }
 0x2e4   :  { %849 = vrot.lane.b32.xlu1 %v2749_v42, %s2204_s23 }
 0x2ea   :  { %2004 = vrot.lane.b32.xlu2 %v2003_v13, %s2198_s2  ;;  %771 = vrot.lane.b32.xlu0 %v2751_v45, %s2201_s20 }
 0x2ec   :  { %811 = vrot.lane.b32.xlu1 %v2749_v42, %s2199_s4 }
 0x2f2   :  { %1061 = vrot.lane.b32.xlu2 %v2600_v51, %s2203_s22  ;;  %749 = vrot.lane.b32.xlu0 %v2749_v42, %s2202_s21 }
 0x2f4   :  { %1055 = vrot.lane.b32.xlu1 %v2686_v22, %s2203_s22 }
 0x2fa   :  { %2009 = vrot.lane.b32.xlu2 %v3185_v0, %s2204_s23  ;;  %711 = vrot.lane.b32.xlu0 %v2749_v42, %s2203_s22 }
 0x2fc   :  { %1307 = vrot.lane.b32.xlu1 %v3185_v0, %s2198_s2 }
 0x302   :  { %1093 = vrot.lane.b32.xlu2 %v3185_v0, %s2194_s12  ;;  %709 = vrot.lane.b32.xlu0 %v3185_v0, %s2203_s22 }
 0x30a   :  { %1129 = vrot.lane.b32.xlu0 %v3185_v0, %s2202_s21 }
 0x312   :  { %791 = vrot.lane.b32.xlu0 %v2749_v42, %s2200_s19 }
 0x31a   :  { %1057 = vrot.lane.b32.xlu0 %v2663_v12, %s2203_s22 }
 0x322   :  { %2014 = vrot.lane.b32.xlu0 %v3185_v0, %s2203_s22 }
 0x324   :  { %v2824_v39 = vpop.permute.xlu2 %793 }
 0x32a   :  { %1666 = vrot.lane.b32.xlu0 %v3185_v0, %s2204_s23 }
 0x32c   :  { %v752_v3 = vpop.permute.xlu2 %751 }
 0x332   :  { %1628 = vrot.lane.b32.xlu0 %v3185_v0, %s2199_s4 }
 0x334   :  { %v2836_v5 = vpop.permute.xlu2 %713 }
 0x33a   :  { %1580 = vrot.lane.b32.xlu0 %v3185_v0, %s2201_s20 }
 0x33c   :  { %v2842_v8 = vpop.permute.xlu2 %1994  ;;  %v852_v9 = vpop.permute.xlu0 %851 }
 0x33d   :  { %v856_v10 = vsel %vm530_vm7, %v852_v9, %v2675_v14  ;;  %v3166_v57 = vunpack.i.h.bf16 %v2842_v8 }
 0x33e   :  { %1832 = vmatpush.msk.msrb.mxu2 %vm2486_vm6, %v856_v10  ;;  %v2848_v11 = vpop.permute.xlu1 %1989 }
 0x344   :  { %v1985_v17 = vpop.permute.xlu0 %1984  ;;  %v2005_v18 = vpop.permute.xlu2 %2004 }
 0x345   :  { %v1987_v23 = vunpack.i.h.bf16 %v1985_v17  ;;  %v1986_v24 = vunpack.i.l.bf16 %v1985_v17  ;;  %v2006_v25 = vunpack.i.l.bf16 %v2005_v18  ;;  %v1951_v17 = vunpack.i.l.bf16 %v2684_v20 }
 0x346   :  { %v2000_v28 = vpop.permute.xlu1 %1999 }
 0x347   :  { %v2002_v26 = vunpack.i.h.bf16 %v2000_v28  ;;  %v2001_v50 = vunpack.i.l.bf16 %v2000_v28  ;;  %v838_v14 = vsel %vm493_vm0, %v1986_v24, %v1987_v23  ;;  %v2857_v63 = vsel %vm493_vm0, %v2006_v25, %v3165_v27 }
 0x348   :  { %915 = vmatpush.msrb.mxu2 %v838_v14  ;;  %v1956_v14 = vunpack.i.l.bf16 %v2713_v30 }
 0x349   :  { %v2862_v13 = vsel %vm280_vm10, %v3166_v57, %v2001_v50  ;;  %v2867_v10 = vsel %vm280_vm10, %v2002_v26, %v3167_v21  ;;  %v2007_v57 = vunpack.i.h.bf16 %v2005_v18 }
 0x34a   :  { %v798_v50 = vsel %vm411_vm4, %v2824_v39, %v1956_v14 }
 0x34c   :  { %v814_v28 = vpop.permute.xlu0 %813  ;;  %v2870_v23 = vpop.permute.xlu2 %1061 }
 0x34d   :  { %v818_v25 = vsel %vm452_vm1, %v814_v28, %v1951_v17 }
 0x34e   :  { %1833 = vmatpush.msk.msrb.mxu2 %vm2468_vm3, %v818_v25  ;;  %v2876_v27 = vpop.permute.xlu1 %1063 }
 0x350   :  { %1834 = vmatpush.msk.msrb.mxu2 %vm2486_vm6, %v798_v50 }
 0x352   :  { %918 = vmatpush.msrb.mxu2 %v2751_v45  ;;  %v837_v45 = vsel %vm493_vm0, %v2007_v57, %v1986_v24  ;;  %v1992_v24 = vunpack.i.h.bf16 %v2848_v11  ;;  %v1991_v57 = vunpack.i.l.bf16 %v2848_v11  ;;  %v2918_v11 = vld [vmem:[#allocation9] sm:$0xff] }
 0x354   :  { %v2010_v20 = vpop.permute.xlu2 %2009  ;;  %v2883_v26 = vpop.permute.xlu0 %769 }
 0x355   :  { %v2012_v30 = vunpack.i.h.bf16 %v2010_v20  ;;  %v2011_v21 = vunpack.i.l.bf16 %v2010_v20 }
 0x356   :  { %v850_v17 = vpop.permute.xlu1 %849 }
 0x357   :  { %v855_v52 = vsel %vm530_vm7, %v850_v17, %v852_v9  ;;  %v1348_v25 = vsel %vm530_vm7, %v2810_v49, %v2011_v21  ;;  %v1346_v14 = vsel %vm530_vm7, %v2747_v19, %v2012_v30  ;;  %v736_v17 = vsel %vm280_vm10, %v1991_v57, %v1992_v24 }
 0x358   :  { %1826 = vmatpush.msk.msra.mxu1 %vm2482_vm5, %v855_v52  ;;  %1860 = vmatpush.msk.msra.mxu3 %vm2486_vm6, %v1348_v25 }
 0x35a   :  { %895 = vmatpush.msra.mxu1 %v837_v45  ;;  %1861 = vmatpush.msk.msra.mxu3 %vm2486_vm6, %v1346_v14 }
 0x35c   :  { %v772_v18 = vpop.permute.xlu0 %771 }
 0x35d   :  { %v774_v9 = vsel %vm362_vm8, %v2883_v26, %v772_v18  ;;  %v1347_v18 = vsel %vm530_vm7, %v2734_v53, %v2810_v49 }
 0x35e   :  { %1835 = vmatpush.msk.msrb.mxu2 %vm2468_vm3, %v774_v9  ;;  %v812_v52 = vpop.permute.xlu1 %811  ;;  %v1981_v9 = vunpack.i.l.bf16 %v2826_v47 }
 0x35f   :  { %v817_v21 = vsel %vm452_vm1, %v812_v52, %v814_v28  ;;  %v1982_v28 = vunpack.i.h.bf16 %v2826_v47  ;;  %v3193_v52 = vmov 1.0   ;;  %v3194_v47 = vunpack.i.l.bf16 %v2736_v62 }
 0x360   :  { %1827 = vmatpush.msk.msra.mxu1 %vm2464_vm2, %v817_v21  ;;  %v1345_v21 = vsel %vm530_vm7, %v2818_v15, %v2747_v19  ;;  %v1270_v19 = vsel %vm452_vm1, %v2738_v32, %v2732_v36 }
 0x361   :  { %v1311_v49 = vsel %vm493_vm0, %v1981_v9, %v1982_v28 }
 0x364   :  { %v750_v50 = vpop.permute.xlu0 %749 }
 0x365   :  { %v754_v20 = vsel %vm321_vm9, %v750_v50, %v752_v3 }
 0x366   :  { %1836 = vmatpush.msk.msrb.mxu2 %vm2486_vm6, %v754_v20  ;;  %v2909_v30 = vpop.permute.xlu1 %1055 }
 0x368   :  { %921 = vmatpush.msrb.mxu2 %v736_v17 }
 0x36c   :  { %v712_v25 = vpop.permute.xlu0 %711 }
 0x36d   :  { %v716_v45 = vsel %vm239_vm11, %v712_v25, %v2836_v5  ;;  %v1967_v5 = vunpack.i.h.bf16 %v2736_v62  ;;  %v1230_v62 = vsel %vm411_vm4, %v2740_v61, %v2702_v40  ;;  %v1961_v40 = vunpack.i.l.bf16 %v2704_v41 }
 0x36e   :  { %v1308_v14 = vpop.permute.xlu1 %1307  ;;  %1837 = vmatpush.msk.msrb.mxu2 %vm2468_vm3, %v716_v45 }
 0x36f   :  { %v1312_v3 = vsel %vm493_vm0, %v1982_v28, %v1308_v14  ;;  %v1310_v24 = vsel %vm493_vm0, %v3194_v47, %v1967_v5  ;;  %v773_v41 = vsel %vm362_vm8, %v1961_v40, %v2883_v26  ;;  %v1068_v26 = vsel %vm239_vm11, %v2870_v23, %v2876_v27 }
 0x370   :  { %923 = vmatpush.msrb.mxu2 %v3193_v52  ;;  %1479 = vmatpush.msra.mxu3 %v1312_v3  ;;  %v1269_v27 = vsel %vm452_vm1, %v2834_v4, %v2738_v32 }
 0x371   :  { %1799 = vmatmul.msk.f32.vlgmr.msra.gmra.mxu3 %vm587_vm12, %v2587_v38  ;;  %1797 = vmatmul.msk.f32.vlgmr.msrb.gmra.mxu2 %vm884_vm13, %v2918_v11 }
 0x372   :  { %1848 = vmatpush.msk.msra.mxu2 %vm2482_vm5, %v1347_v18 }
 0x374   :  { %1849 = vmatpush.msk.msra.mxu2 %vm2482_vm5, %v1345_v21  ;;  %v710_v53 = vpop.permute.xlu0 %709 }
 0x376   :  { %1439 = vmatpush.msra.mxu2 %v1311_v49 }
 0x378   :  { %1444 = vmatpush.msrb.mxu2 %v1310_v24 }
 0x379   :  { %1798 = vmatmul.msk.f32.vlgmr.msra.gmra.mxu2 %vm587_vm12, %v2587_v38 }
 0x37a   :  { %1850 = vmatpush.msk.msrb.mxu2 %vm2468_vm3, %v2695_v33 }
 0x37c   :  { %1851 = vmatpush.msk.msrb.mxu2 %vm2468_vm3, %v1270_v19  ;;  %v1130_v15 = vpop.permute.xlu0 %1129 }
 0x37e   :  { %1852 = vmatpush.msk.msrb.mxu2 %vm2486_vm6, %v2717_v37  ;;  %v1142_v37 = vsel %vm321_vm9, %v2838_v7, %v2814_v6 }
 0x380   :  { %1853 = vmatpush.msk.msrb.mxu2 %vm2486_vm6, %v1230_v62 }
 0x382   :  { %1449 = vmatpush.msrb.mxu2 %v2616_v1  ;;  %v1144_v1 = vsel %vm321_vm9, %v2806_v35, %v2700_v59  ;;  %v1996_v59 = vunpack.i.l.bf16 %v2842_v8 }
 0x384   :  { %1450 = vmatpush.msrb.mxu2 %v2663_v12  ;;  %v792_v33 = vpop.permute.xlu0 %791  ;;  %v1977_v12 = vunpack.i.h.bf16 %v2742_v16  ;;  %v735_v6 = vsel %vm280_vm10, %v1996_v59, %v1991_v57 }
 0x385   :  { %v797_v38 = vsel %vm411_vm4, %v792_v33, %v2824_v39 }
 0x386   :  { %1854 = vmatpush.msk.msrb.mxu2 %vm2468_vm3, %v2711_v48  ;;  %1828 = vmatpush.msk.msra.mxu1 %vm2482_vm5, %v797_v38  ;;  %v1971_v48 = vunpack.i.l.bf16 %v2820_v58 }
 0x388   :  { %1855 = vmatpush.msk.msrb.mxu2 %vm2468_vm3, %v2745_v46  ;;  %898 = vmatpush.msra.mxu1 %v2749_v42  ;;  %v753_v36 = vsel %vm321_vm9, %v1971_v48, %v750_v50  ;;  %v3195_v46 = vunpack.i.l.bf16 %v2742_v16  ;;  %v715_v50 = vsel %vm239_vm11, %v710_v53, %v712_v25 }
 0x38a   :  { %1856 = vmatpush.msk.msrb.mxu2 %vm2486_vm6, %v1144_v1  ;;  %1829 = vmatpush.msk.msra.mxu1 %vm2464_vm2, %v773_v41  ;;  %v1108_v42 = vsel %vm280_vm10, %v3195_v46, %v1977_v12 }
 0x38c   :  { %1857 = vmatpush.msk.msrb.mxu2 %vm2486_vm6, %v1142_v37  ;;  %1830 = vmatpush.msk.msra.mxu1 %vm2482_vm5, %v753_v36  ;;  %v1058_v39 = vpop.permute.xlu0 %1057 }
 0x38d   :  { %v1066_v16 = vsel %vm239_vm11, %v2909_v30, %v1058_v39 }
 0x38e   :  { %1455 = vmatpush.msrb.mxu2 %v1108_v42  ;;  %901 = vmatpush.msra.mxu1 %v735_v6 }
 0x390   :  { %1456 = vmatpush.msrb.mxu2 %v2862_v13  ;;  %1831 = vmatpush.msk.msra.mxu1 %vm2464_vm2, %v715_v50 }
 0x392   :  { %1858 = vmatpush.msk.msrb.mxu2 %vm2468_vm3, %v1068_v26  ;;  %903 = vmatpush.msra.mxu1 %v3193_v52 }
 0x393   :  { %1796 = vmatmul.msk.f32.vlgmr.msra.gmra.mxu1 %vm884_vm13, %v2918_v11 }
 0x394   :  { %1859 = vmatpush.msk.msrb.mxu2 %vm2468_vm3, %v1066_v16  ;;  %1404 = vmatpush.msrb.mxu1 %v2857_v63  ;;  %v1229_v63 = vsel %vm411_vm4, %v2830_v2, %v2740_v61  ;;  %v2015_v32 = vpop.permute.xlu0 %2014 }
 0x395   :  { %v2016_v61 = vunpack.i.l.bf16 %v2015_v32 }
 0x396   :  { %1459 = vmatpush.msrb.mxu2 %v3193_v52  ;;  %1838 = vmatpush.msk.msrb.mxu1 %vm2464_vm2, %v2692_v29  ;;  %v1972_v29 = vunpack.i.h.bf16 %v2820_v58 }
 0x397   :  { %1460 = vmatmul.f32.vlgmr.msrb.gmra.mxu2 %v2580_v56 }
 0x398   :  { %1839 = vmatpush.msk.msrb.mxu1 %vm2464_vm2, %v1269_v27 }
 0x39a   :  { %1840 = vmatpush.msk.msrb.mxu1 %vm2482_vm5, %v2698_v54  ;;  %v1143_v54 = vsel %vm321_vm9, %v1972_v29, %v2806_v35  ;;  %v1067_v35 = vsel %vm239_vm11, %v2016_v61, %v2870_v23 }
 0x39c   :  { %1841 = vmatpush.msk.msrb.mxu1 %vm2482_vm5, %v1229_v63  ;;  %v1667_v36 = vpop.permute.xlu0 %1666 }
 0x39e   :  { %1409 = vmatpush.msrb.mxu1 %v2600_v51  ;;  %v1141_v51 = vsel %vm321_vm9, %v1130_v15, %v2838_v7 }
 0x3a0   :  { %1410 = vmatpush.msrb.mxu1 %v2686_v22  ;;  %v1094_v22 = vpop.permute.xlu2 %1093 }
 0x3a2   :  { %1842 = vmatpush.msk.msrb.mxu1 %vm2464_vm2, %v2708_v44  ;;  %v2017_v44 = vunpack.i.h.bf16 %v2015_v32 }
 0x3a4   :  { %1843 = vmatpush.msk.msrb.mxu1 %vm2464_vm2, %v2754_v55  ;;  %v3196_v55 = vunpack.i.h.bf16 %v2842_v8  ;;  %v1065_v2 = vsel %vm239_vm11, %v2017_v44, %v2909_v30  ;;  %v1629_v46 = vpop.permute.xlu0 %1628 }
 0x3a6   :  { %1844 = vmatpush.msk.msrb.mxu1 %vm2482_vm5, %v1143_v54  ;;  %v1105_v58 = vsel %vm280_vm10, %v1094_v22, %v3196_v55 }
 0x3a8   :  { %1845 = vmatpush.msk.msrb.mxu1 %vm2482_vm5, %v1141_v51 }
 0x3aa   :  { %1415 = vmatpush.msrb.mxu1 %v2867_v10 }
 0x3ac   :  { %1416 = vmatpush.msrb.mxu1 %v1105_v58  ;;  %v1581_v39 = vpop.permute.xlu0 %1580 }
 0x3ae   :  { %1846 = vmatpush.msk.msrb.mxu1 %vm2464_vm2, %v1067_v35 }
 0x3b0   :  { %1847 = vmatpush.msk.msrb.mxu1 %vm2464_vm2, %v1065_v2 }
 0x3b2   :  { %1419 = vmatpush.msrb.mxu1 %v3193_v52 }
 0x3b3   :  { %1420 = vmatmul.f32.vlgmr.msrb.gmra.mxu1 %v2580_v56 }
 0x3f4   :  { %v3063_v4 = vpop.f32.mrf.mxu2  ;;  %v1481_v10 = vpop.f32.mrf.mxu3 }
 0x3f5   :  { %v932_v6 = vmul.f32 %v3063_v4, %v3063_v4 }
 0x3fc   :  { %v1441_v7 = vpop.f32.mrf.mxu2 }
 0x410   :  { %v3065_v8 = vpop.f32.mrf.mxu1 }
 0x411   :  { %v928_v59 = vadd.f32 %v3063_v4, %v3065_v8  ;;  %v931_v42 = vmul.f32 %v3065_v8, %v3065_v8 }
 0x413   :  { %v933_v26 = vadd.f32 %v932_v6, %v931_v42 }
 0x41a   :  { %v1461_v13 = vpop.f32.mrf.mxu2 }
 0x41b   :  { %v1482_v23 = vadd.f32 %v1481_v10, %v1461_v13 }
 0x41d   :  { %v1488_v17 = vmul.f32 %v1482_v23, %v1482_v23 }
 0x430   :  { %v1421_v57 = vpop.f32.mrf.mxu1 }
 0x431   :  { %v1442_v20 = vadd.f32 %v1441_v7, %v1421_v57 }
 0x433   :  { %v1484_v25 = vadd.f32 %v1482_v23, %v1442_v20  ;;  %v1487_v30 = vmul.f32 %v1442_v20, %v1442_v20 }
 0x435   :  { %1485 = vadd.xlane.f32.xlu2 %v1484_v25  ;;  %v1489_v28 = vadd.f32 %v1488_v17, %v1487_v30 }
 0x437   :  { %1490 = vadd.xlane.f32.xlu1 %v1489_v28 }
 0x450   :  { %1608 = vrot.lane.b32.xlu1 %v3185_v0, %s2200_s19 }
 0x4a8   :  { %v1486_v56 = vpop.xlane.xlu2 %1485 }
 0x4a9   :  { %v1492_v45 = vmul.f32 0.00390625, %v1486_v56 }
 0x4aa   :  { %v1491_v14 = vpop.xlane.xlu1 %1490 }
 0x4ab   :  { %v1493_v3 = vmul.f32 0.00390625, %v1491_v14  ;;  %v1494_v18 = vmul.f32 %v1492_v45, %v1492_v45  ;;  %v1497_v62 = vsub.f32 %v1442_v20, %v1492_v45  ;;  %v1498_v33 = vsub.f32 %v1482_v23, %v1492_v45 }
 0x4ad   :  { %v1495_v9 = vsub.f32 %v1493_v3, %v1494_v18 }
 0x4af   :  { %v1496_v5 = vmax.f32 %v1495_v9, 0.0 }
 0x4b1   :  { %v1499_v21 = vadd.f32 1e-05, %v1496_v5 }
 0x4b3   :  { %2030 = vrsqrt.f32 %v1499_v21  ;;  %vm1506_vm14 = vweird.f32 %v1499_v21 }
 0x4b9   :  { %v2031_v53 = vpop.eup %2030 }
 0x4ba   :  { %v1501_v49 = vmul.f32 %v2031_v53, %v1499_v21  ;;  %vm1507_vm12 = vweird.f32 %v2031_v53 }
 0x4bb   :  { %vm1508_vm15 = vmor %vm1506_vm14, %vm1507_vm12 }
 0x4bc   :  { %v1502_v47 = vmul.f32 %v2031_v53, %v1501_v49 }
 0x4be   :  { %v1503_v24 = vmul.f32 0.5, %v1502_v47 }
 0x4c0   :  { %v1504_v19 = vsub.f32 1.5, %v1503_v24 }
 0x4c2   :  { %v1505_v15 = vmul.f32 %v2031_v53, %v1504_v19  ;;  %v1609_v51 = vpop.permute.xlu1 %1608 }
 0x4c4   :  { %v1509_v38 = vsel %vm1508_vm15, %v2031_v53, %v1505_v15 }
 0x4c5   :  { %v1510_v40 = vmul.f32 %v1509_v38, %v1497_v62  ;;  %v1511_v1 = vmul.f32 %v1509_v38, %v1498_v33 }
 0x4c7   :  { %v1512_v12 = vmax.f32 %v1510_v40, 0.0  ;;  %v1513_v48 = vmax.f32 %v1511_v1, 0.0 }
 0x4c9   :  { %1606 = vrot.lane.b32.xlu2 %v1513_v48, %s2200_s19  ;;  %1664 = vrot.lane.b32.xlu0 %v1513_v48, %s2204_s23  ;;  %v2018_v37 = vpack.i.bf16 0.0, %v1513_v48  ;;  %v2023_v41 = vpack.i.bf16 %v1513_v48, %v1512_v12 }
 0x4ca   :  { %1624 = vrot.lane.b32.xlu1 %v1512_v12, %s2199_s4 }
 0x4d1   :  { %1584 = vrot.lane.b32.xlu2 %v1513_v48, %s2201_s20  ;;  %2019 = vrot.lane.b32.xlu0 %v2018_v37, %s2198_s2 }
 0x4d2   :  { %1604 = vrot.lane.b32.xlu1 %v1512_v12, %s2200_s19 }
 0x4d9   :  { %1564 = vrot.lane.b32.xlu2 %v1513_v48, %s2202_s21  ;;  %1626 = vrot.lane.b32.xlu0 %v1513_v48, %s2199_s4 }
 0x4da   :  { %1526 = vrot.lane.b32.xlu1 %v1513_v48, %s2203_s22 }
 0x4e1   :  { %1524 = vrot.lane.b32.xlu2 %v1512_v12, %s2203_s22  ;;  %1662 = vrot.lane.b32.xlu0 %v1512_v12, %s2204_s23 }
 0x4e2   :  { %1542 = vrot.lane.b32.xlu1 %v3185_v0, %s2194_s12 }
 0x4e9   :  { %1560 = vrot.lane.b32.xlu2 %v3185_v0, %s2202_s21  ;;  %1644 = vrot.lane.b32.xlu0 %v1512_v12, %s2198_s2 }
 0x4f1   :  { %1582 = vrot.lane.b32.xlu0 %v1512_v12, %s2201_s20 }
 0x4f9   :  { %1562 = vrot.lane.b32.xlu0 %v1512_v12, %s2202_s21 }
 0x501   :  { %2024 = vrot.lane.b32.xlu0 %v2023_v41, %s2194_s12 }
 0x509   :  { %1522 = vrot.lane.b32.xlu0 %v3185_v0, %s2203_s22 }
 0x512   :  { %929 = vadd.xlane.f32.xlu2 %v928_v59 }
 0x523   :  { %v1607_v0 = vpop.permute.xlu2 %1606 }
 0x524   :  { %v1611_v44 = vsel %vm411_vm4, %v1607_v0, %v1609_v51 }
 0x52b   :  { %v1585_v61 = vpop.permute.xlu2 %1584 }
 0x533   :  { %934 = vadd.xlane.f32.xlu0 %v933_v26  ;;  %v1565_v2 = vpop.permute.xlu2 %1564 }
 0x53b   :  { %v1665_v50 = vpop.permute.xlu0 %1664  ;;  %v1525_v20 = vpop.permute.xlu2 %1524 }
 0x53c   :  { %v1669_v16 = vsel %vm530_vm7, %v1665_v50, %v1667_v36  ;;  %v1625_v55 = vpop.permute.xlu1 %1624 }
 0x53d   :  { %1868 = vmatpush.msk.msrb.mxu3 %vm2486_vm6, %v1669_v16 }
 0x543   :  { %v2020_v27 = vpop.permute.xlu0 %2019  ;;  %v1561_v28 = vpop.permute.xlu2 %1560 }
 0x544   :  { %v2022_v63 = vunpack.i.h.bf16 %v2020_v27  ;;  %v2021_v29 = vunpack.i.l.bf16 %v2020_v27  ;;  %v1605_v10 = vpop.permute.xlu1 %1604 }
 0x545   :  { %v1610_v57 = vsel %vm411_vm4, %v1605_v10, %v1607_v0 }
 0x546   :  { %v1651_v54 = vsel %vm493_vm0, %v2021_v29, %v2022_v63 }
 0x547   :  { %1727 = vmatpush.msrb.mxu3 %v1651_v54 }
 0x54b   :  { %v1627_v22 = vpop.permute.xlu0 %1626 }
 0x54c   :  { %v1631_v32 = vsel %vm452_vm1, %v1627_v22, %v1629_v46  ;;  %v1630_v23 = vsel %vm452_vm1, %v1625_v55, %v1627_v22  ;;  %v1527_v56 = vpop.permute.xlu1 %1526 }
 0x54d   :  { %1869 = vmatpush.msk.msrb.mxu3 %vm2468_vm3, %v1631_v32  ;;  %v1529_v47 = vsel %vm239_vm11, %v1525_v20, %v1527_v56 }
 0x54f   :  { %1870 = vmatpush.msk.msrb.mxu3 %vm2486_vm6, %v1611_v44 }
 0x551   :  { %1730 = vmatpush.msrb.mxu3 %v1513_v48 }
 0x553   :  { %v1663_v58 = vpop.permute.xlu0 %1662 }
 0x554   :  { %v1668_v35 = vsel %vm530_vm7, %v1663_v58, %v1665_v50  ;;  %v1543_v9 = vpop.permute.xlu1 %1542 }
 0x555   :  { %1862 = vmatpush.msk.msrb.mxu0 %vm2482_vm5, %v1668_v35 }
 0x55b   :  { %v1645_v7 = vpop.permute.xlu0 %1644 }
 0x55c   :  { %v1650_v13 = vsel %vm493_vm0, %v1645_v7, %v2021_v29 }
 0x55d   :  { %1707 = vmatpush.msrb.mxu0 %v1650_v13 }
 0x55f   :  { %1863 = vmatpush.msk.msrb.mxu0 %vm2464_vm2, %v1630_v23 }
 0x561   :  { %1864 = vmatpush.msk.msrb.mxu0 %vm2482_vm5, %v1610_v57 }
 0x563   :  { %1710 = vmatpush.msrb.mxu0 %v1512_v12  ;;  %v1583_v17 = vpop.permute.xlu0 %1582 }
 0x564   :  { %v1586_v25 = vsel %vm362_vm8, %v1581_v39, %v1583_v17  ;;  %v1587_v30 = vsel %vm362_vm8, %v1583_v17, %v1585_v61 }
 0x565   :  { %1865 = vmatpush.msk.msrb.mxu0 %vm2464_vm2, %v1586_v25  ;;  %1871 = vmatpush.msk.msrb.mxu3 %vm2468_vm3, %v1587_v30 }
 0x56b   :  { %v1563_v45 = vpop.permute.xlu0 %1562 }
 0x56c   :  { %v1566_v14 = vsel %vm321_vm9, %v1561_v28, %v1563_v45  ;;  %v1567_v3 = vsel %vm321_vm9, %v1563_v45, %v1565_v2 }
 0x56d   :  { %1866 = vmatpush.msk.msrb.mxu0 %vm2482_vm5, %v1566_v14  ;;  %1872 = vmatpush.msk.msrb.mxu3 %vm2486_vm6, %v1567_v3 }
 0x573   :  { %v2025_v18 = vpop.permute.xlu0 %2024 }
 0x574   :  { %v2027_v5 = vunpack.i.h.bf16 %v2025_v18  ;;  %v2026_v21 = vunpack.i.l.bf16 %v2025_v18 }
 0x576   :  { %v1548_v53 = vsel %vm280_vm10, %v1543_v9, %v2026_v21  ;;  %v1549_v49 = vsel %vm280_vm10, %v2026_v21, %v2027_v5 }
 0x577   :  { %1713 = vmatpush.msrb.mxu0 %v1548_v53  ;;  %1733 = vmatpush.msrb.mxu3 %v1549_v49 }
 0x579   :  { %1873 = vmatpush.msk.msrb.mxu3 %vm2468_vm3, %v1529_v47 }
 0x57b   :  { %v1523_v43 = vpop.permute.xlu0 %1522  ;;  %1735 = vmatpush.msrb.mxu3 %v3193_v52 }
 0x57c   :  { %v1528_v34 = vsel %vm239_vm11, %v1523_v43, %v1525_v20  ;;  %1801 = vmatmul.msk.f32.vlgmr.msrb.gmra.mxu3 %vm884_vm13, %v2918_v11 }
 0x57d   :  { %1867 = vmatpush.msk.msrb.mxu0 %vm2464_vm2, %v1528_v34 }
 0x57f   :  { %1715 = vmatpush.msrb.mxu0 %v3193_v52 }
 0x580   :  { %1800 = vmatmul.msk.f32.vlgmr.msrb.gmra.mxu0 %vm884_vm13, %v2918_v11 }
 0x585   :  { %v930_v24 = vpop.xlane.xlu2 %929 }
 0x586   :  { %v936_v19 = vmul.f32 0.00390625, %v930_v24 }
 0x588   :  { %v938_v62 = vmul.f32 %v936_v19, %v936_v19  ;;  %v941_v52 = vsub.f32 %v3065_v8, %v936_v19  ;;  %v942_v11 = vsub.f32 %v3063_v4, %v936_v19 }
 0x5a6   :  { %v935_v60 = vpop.xlane.xlu0 %934 }
 0x5a7   :  { %v937_v15 = vmul.f32 0.00390625, %v935_v60 }
 0x5a9   :  { %v939_v33 = vsub.f32 %v937_v15, %v938_v62 }
 0x5ab   :  { %v940_v38 = vmax.f32 %v939_v33, 0.0 }
 0x5ad   :  { %v943_v40 = vadd.f32 1e-05, %v940_v38 }
 0x5af   :  { %2032 = vrsqrt.f32 %v943_v40  ;;  %vm950_vm1 = vweird.f32 %v943_v40 }
 0x5b5   :  { %v2033_v1 = vpop.eup %2032 }
 0x5b6   :  { %v945_v12 = vmul.f32 %v2033_v1, %v943_v40  ;;  %vm951_vm0 = vweird.f32 %v2033_v1 }
 0x5b7   :  { %vm952_vm2 = vmor %vm950_vm1, %vm951_vm0 }
 0x5b8   :  { %v946_v48 = vmul.f32 %v2033_v1, %v945_v12 }
 0x5ba   :  { %v947_v37 = vmul.f32 0.5, %v946_v48 }
 0x5bc   :  { %v948_v31 = vsub.f32 1.5, %v947_v37 }
 0x5be   :  { %v949_v41 = vmul.f32 %v2033_v1, %v948_v31 }
 0x5c0   :  { %v953_v59 = vsel %vm952_vm2, %v2033_v1, %v949_v41 }
 0x5c1   :  { %v954_v36 = vmul.f32 %v953_v59, %v941_v52  ;;  %v955_v46 = vmul.f32 %v953_v59, %v942_v11 }
 0x5c3   :  { %v956_v42 = vmax.f32 %v954_v36, 0.0  ;;  %v957_v6 = vmax.f32 %v955_v46, 0.0 }
 0x5c5   :  { %958 = vst [vmem:[#allocation13] sm:$0xff] %v956_v42 }
 0x5c6   :  { %959 = vst [vmem:[#allocation13 + $0x8] sm:$0xff] %v957_v6 }
 0x5fd   :  { %v1717_v39 = vpop.f32.mrf.mxu0 }
 0x5fe   :  { %v1743_v26 = vmul.f32 %v1717_v39, %v1717_v39 }
 0x5ff   :  { %v1737_v50 = vpop.f32.mrf.mxu3 }
 0x600   :  { %v1744_v16 = vmul.f32 %v1737_v50, %v1737_v50  ;;  %v1740_v0 = vadd.f32 %v1737_v50, %v1717_v39 }
 0x602   :  { %1741 = vadd.xlane.f32.xlu1 %v1740_v0  ;;  %v1745_v27 = vadd.f32 %v1744_v16, %v1743_v26 }
 0x604   :  { %1746 = vadd.xlane.f32.xlu2 %v1745_v27 }
 0x675   :  { %v1742_v63 = vpop.xlane.xlu1 %1741 }
 0x676   :  { %v1748_v8 = vmul.f32 0.00390625, %v1742_v63 }
 0x677   :  { %v1747_v29 = vpop.xlane.xlu2 %1746 }
 0x678   :  { %v1750_v4 = vmul.f32 %v1748_v8, %v1748_v8  ;;  %v1749_v54 = vmul.f32 0.00390625, %v1747_v29  ;;  %v1753_v7 = vsub.f32 %v1717_v39, %v1748_v8  ;;  %v1754_v13 = vsub.f32 %v1737_v50, %v1748_v8 }
 0x67a   :  { %v1751_v51 = vsub.f32 %v1749_v54, %v1750_v4 }
 0x67c   :  { %v1752_v22 = vmax.f32 %v1751_v51, 0.0 }
 0x67e   :  { %v1755_v32 = vadd.f32 1e-05, %v1752_v22 }
 0x680   :  { %2034 = vrsqrt.f32 %v1755_v32  ;;  %vm1762_vm4 = vweird.f32 %v1755_v32 }
 0x686   :  { %v2035_v61 = vpop.eup %2034 }
 0x687   :  { %v1757_v44 = vmul.f32 %v2035_v61, %v1755_v32  ;;  %vm1763_vm3 = vweird.f32 %v2035_v61 }
 0x688   :  { %vm1764_vm5 = vmor %vm1762_vm4, %vm1763_vm3 }
 0x689   :  { %v1758_v55 = vmul.f32 %v2035_v61, %v1757_v44 }
 0x68b   :  { %v1759_v58 = vmul.f32 0.5, %v1758_v55 }
 0x68d   :  { %v1760_v35 = vsub.f32 1.5, %v1759_v58 }
 0x68f   :  { %v1761_v2 = vmul.f32 %v2035_v61, %v1760_v35 }
 0x691   :  { %v1765_v10 = vsel %vm1764_vm5, %v2035_v61, %v1761_v2 }
 0x692   :  { %v1766_v23 = vmul.f32 %v1765_v10, %v1753_v7  ;;  %v1767_v57 = vmul.f32 %v1765_v10, %v1754_v13 }
 0x694   :  { %v1768_v20 = vmax.f32 %v1766_v23, 0.0  ;;  %v1769_v17 = vmax.f32 %v1767_v57, 0.0 }
 0x696   :  { %1771 = vst [vmem:[#allocation13 + $0x10] sm:$0xff] %v1768_v20 }
 0x697   :  { %1772 = vst [vmem:[#allocation13 + $0x18] sm:$0xff] %v1769_v17 }
 0x698   :  { %1785 = dma.vmem_to_hbm [thread:$0]  %s1778_s25, 512, %s1780_s28, [#allocation6], %s2193_s11, %s2193_s11, %s2194_s12  }
 0x699   :  { %2186 = dma.done.wait [#allocation6], 512  }
 0x69a   :  { %2187 = vsyncadd [#allocation6], 4294966784 }
 0x69b   :  { %1790 = vsyncpa [#allocation5], 1 }
 0x69c   :  { %1791 = vsyncpa [#allocation8], 1 }
 0x69d   :  { %1792 = vsyncpa [#allocation11], 1 }
 0x69e   :  { %1793 = vsyncpa [#allocation6], 1 }

</bundles_post_ra>
